<compile_context>
chip_gen: v7x
topology: tpu7x:2x2x1
jax: 0.10.0
libtpu: 0.0.40
codegen_flags: <defaults>
</compile_context>

<pallas_src>
from functools import partial

import jax
import jax.numpy as jnp
from jax.experimental import pallas as pl
from jax.experimental.pallas import tpu as pltpu


def _row_tile(m):
    """Largest multiple-of-128 row tile up to 512 (VMEM-safe incl. v7x 64 MiB)."""
    return int(min(512, 128 * pl.cdiv(m, 128)))


# ----------------------------------------------------------------------------
# Fused Pallas kernel: encoder -> VQ -> decoder -> masked partial loss sums
# ----------------------------------------------------------------------------
def _fused_vqvae_kernel(patches_ref, target_ref,
                        ew1_ref, eb1_ref, ew2_ref, eb2_ref,
                        cb_ref, cbsq_ref,
                        dw1_ref, db1_ref, dw2_ref, db2_ref,
                        y_ref, idx_ref, vqsq_ref, rcsq_ref,
                        *, k, rows_total, needs_mask):
    f32 = jnp.float32
    bf16 = jnp.bfloat16
    tm = patches_ref.shape[0]

    # ---- encoder (conv lowered to matmul; bf16 operands, f32 accumulation) ----
    h1 = jnp.dot(patches_ref[...], ew1_ref[...], preferred_element_type=f32)
    h1 = jnp.maximum(h1 + eb1_ref[...], 0.0)                       # (tm, hidden)
    z = jnp.dot(h1.astype(bf16), ew2_ref[...], preferred_element_type=f32)
    z = z + eb2_ref[...]                                           # (tm, D)

    # ---- VQ: argmin_k ||z - e_k||^2, computed lane-dense (transposed) ----
    # z_sq is constant per row -> dropped for the argmin.
    e = cb_ref[...]                                                # (K, D) f32
    cross_t = jax.lax.dot_general(
        e.astype(bf16), z.astype(bf16), (((1,), (1,)), ((), ())),
        preferred_element_type=f32)                                # (K, tm)
    score = cbsq_ref[...] - 2.0 * cross_t                          # (K, tm)
    min_s = jnp.min(score, axis=0, keepdims=True)                  # (1, tm)
    sub_iota = jax.lax.broadcasted_iota(jnp.int32, score.shape, 0)
    idx = jnp.min(jnp.where(score <= min_s, sub_iota, k),
                  axis=0, keepdims=True)                           # (1, tm) int32
    one_hot_t = (sub_iota == idx).astype(f32)                      # (K, tm)
    # exact codeword gather: contract over K -> (tm, D), keeps f32 codebook values
    zq = jax.lax.dot_general(one_hot_t, e, (((0,), (0,)), ((), ())),
                             preferred_element_type=f32)           # (tm, D)

    # ---- decoder (two 1x1 convs as matmuls) ----
    h2 = jnp.dot(zq.astype(bf16), dw1_ref[...], preferred_element_type=f32)
    h2 = jnp.maximum(h2 + db1_ref[...], 0.0)                       # (tm, hidden)
    y = jnp.dot(h2.astype(bf16), dw2_ref[...], preferred_element_type=f32)
    y = y + db2_ref[...]                                           # (tm, 4C)

    y_ref[...] = y.astype(y_ref.dtype)
    idx_ref[...] = idx.reshape(1, 1, tm)                           # lane-dense store

    # ---- per-tile partial loss sums (padded rows masked out when present) ----
    dz = z - zq
    dy = y - target_ref[...]
    if needs_mask:
        rows = (pl.program_id(0) * tm
                + jax.lax.broadcasted_iota(jnp.int32, (tm, 1), 0))
        valid = (rows < rows_total).astype(f32)                    # (tm, 1)
        dz = dz * valid
        dy = dy * valid
    vqsq_ref[...] = jnp.sum(dz * dz).reshape(1, 1, 1)
    rcsq_ref[...] = jnp.sum(dy * dy).reshape(1, 1, 1)


# ----------------------------------------------------------------------------
# JAX glue (layout plumbing only; no hot compute)
# ----------------------------------------------------------------------------
def im2col(x, kh, kw, stride, pad):
    """x: (B, H, W, C) -> patches (B*Ho*Wo, kh*kw*C)."""
    # TODO(synk): fold im2col into the kernel with a halo-window BlockSpec/DMA to
    # avoid the 9x expanded HBM copy at production image sizes.
    B, H, W, C = x.shape
    xp = jnp.pad(x, ((0, 0), (pad, pad), (pad, pad), (0, 0)))
    Ho = (H + 2 * pad - kh) // stride + 1
    Wo = (W + 2 * pad - kw) // stride + 1
    cols = []
    for i in range(kh):
        for j in range(kw):
            cols.append(xp[:, i:i + stride * Ho:stride, j:j + stride * Wo:stride, :])
    patches = jnp.concatenate(cols, axis=-1)
    return patches.reshape(B * Ho * Wo, kh * kw * C), (B, Ho, Wo)


def init_params(key, c_in, hidden, d, k):
    keys = jax.random.split(key, 6)
    return {
        "enc_w1": jax.random.normal(keys[0], (3 * 3 * c_in, hidden), jnp.float32) * 0.1,
        "enc_b1": jnp.zeros((hidden,), jnp.float32),
        "enc_w2": jax.random.normal(keys[1], (hidden, d), jnp.float32) * 0.1,
        "enc_b2": jnp.zeros((d,), jnp.float32),
        "codebook": jax.random.normal(keys[2], (k, d), jnp.float32) * 0.1,
        "dec_w1": jax.random.normal(keys[3], (d, hidden), jnp.float32) * 0.1,
        "dec_b1": jnp.zeros((hidden,), jnp.float32),
        "dec_w2": jax.random.normal(keys[4], (hidden, c_in * 4), jnp.float32) * 0.1,
        "dec_b2": jnp.zeros((c_in * 4,), jnp.float32),
    }


def vqvae_forward(params, x_nchw, penalty_weight=0.25):
    """Matches VQVAE.forward: returns (x_h, (vq_loss, reco_loss), vq_config)."""
    x = jnp.transpose(x_nchw, (0, 2, 3, 1))                        # NCHW -> NHWC
    B, H, W, C = x.shape
    C4 = 4 * C

    # encoder input patches (rows = output pixels of the stride-2 conv)
    patches, (_, Ho, Wo) = im2col(x, 3, 3, stride=2, pad=1)
    M, KP = patches.shape
    # reconstruction target in decoder-row layout (inverse pixel-shuffle of x)
    target = x.reshape(B, Ho, 2, Wo, 2, C).transpose(0, 1, 3, 2, 4, 5).reshape(M, C4)

    tm = _row_tile(M)
    Mp = pl.cdiv(M, tm) * tm
    ntiles = Mp // tm
    patches = patches.astype(jnp.bfloat16)
    if Mp != M:
        patches = jnp.pad(patches, ((0, Mp - M), (0, 0)))
        target = jnp.pad(target, ((0, Mp - M), (0, 0)))

    K, D = params["codebook"].shape
    hidden = params["enc_w1"].shape[1]

    cb = params["codebook"].astype(jnp.float32)
    cb_sq = jnp.sum(cb * cb, axis=1, keepdims=True)                # (K, 1)
    ew1 = params["enc_w1"].astype(jnp.bfloat16)
    ew2 = params["enc_w2"].astype(jnp.bfloat16)
    dw1 = params["dec_w1"].astype(jnp.bfloat16)
    dw2 = params["dec_w2"].astype(jnp.bfloat16)
    eb1 = params["enc_b1"].reshape(1, hidden).astype(jnp.float32)
    eb2 = params["enc_b2"].reshape(1, D).astype(jnp.float32)
    db1 = params["dec_b1"].reshape(1, hidden).astype(jnp.float32)
    db2 = params["dec_b2"].reshape(1, C4).astype(jnp.float32)

    y, idx, vq_sq, rc_sq = pl.pallas_call(
        partial(_fused_vqvae_kernel, k=K, rows_total=M, needs_mask=(Mp != M)),
        grid=(ntiles,),
        out_shape=(
            jax.ShapeDtypeStruct((Mp, C4), jnp.float32),           # decoder rows
            jax.ShapeDtypeStruct((ntiles, 1, tm), jnp.int32),      # lane-dense idx
            jax.ShapeDtypeStruct((ntiles, 1, 1), jnp.float32),     # sum((z-zq)^2)
            jax.ShapeDtypeStruct((ntiles, 1, 1), jnp.float32),     # sum((y-x)^2)
        ),
        in_specs=[
            pl.BlockSpec((tm, KP), lambda i: (i, 0)),              # patches
            pl.BlockSpec((tm, C4), lambda i: (i, 0)),              # reco target
            pl.BlockSpec((KP, hidden), lambda i: (0, 0)),          # enc_w1 (resident)
            pl.BlockSpec((1, hidden), lambda i: (0, 0)),           # enc_b1
            pl.BlockSpec((hidden, D), lambda i: (0, 0)),           # enc_w2
            pl.BlockSpec((1, D), lambda i: (0, 0)),                # enc_b2
            pl.BlockSpec((K, D), lambda i: (0, 0)),                # codebook
            pl.BlockSpec((K, 1), lambda i: (0, 0)),                # codebook sq norms
            pl.BlockSpec((D, hidden), lambda i: (0, 0)),           # dec_w1
            pl.BlockSpec((1, hidden), lambda i: (0, 0)),           # dec_b1
            pl.BlockSpec((hidden, C4), lambda i: (0, 0)),          # dec_w2
            pl.BlockSpec((1, C4), lambda i: (0, 0)),               # dec_b2
        ],
        out_specs=(
            pl.BlockSpec((tm, C4), lambda i: (i, 0)),
            pl.BlockSpec((1, 1, tm), lambda i: (i, 0, 0)),
            pl.BlockSpec((1, 1, 1), lambda i: (i, 0, 0)),
            pl.BlockSpec((1, 1, 1), lambda i: (i, 0, 0)),
        ),
        compiler_params=pltpu.CompilerParams(
            dimension_semantics=("parallel",)),
    )(patches, target, ew1, eb1, ew2, eb2, cb, cb_sq, dw1, db1, dw2, db2)

    # ---- losses (tiny tile-count reductions; denominators = true element counts)
    vq_loss = (1.0 + penalty_weight) * jnp.sum(vq_sq) / (M * D)
    reco_loss = jnp.sum(rc_sq) / (M * C4)                          # == mse(x, x_h)
    # TODO(synk): VGGPerceptualLoss path (enable_perceptual=True) not implemented.
    # TODO(synk): straight-through estimator / stop-gradient split only matters
    #             under autodiff, which is not implemented here (forward-only).

    # ---- reassemble reconstructed image (pixel-shuffle x2, back to NCHW) ----
    y = y[:M].reshape(B, Ho, Wo, 2, 2, C)
    y = jnp.transpose(y, (0, 1, 3, 2, 4, 5)).reshape(B, 2 * Ho, 2 * Wo, C)
    x_h = jnp.transpose(y, (0, 3, 1, 2))

    indices = idx.reshape(Mp)[:M].reshape(B, Ho, Wo)
    vq_config = {"loss": vq_loss, "indices": indices}
    return x_h, (vq_loss, reco_loss), vq_config


if __name__ == "__main__":
    B, C, H, W = 2, 4, 16, 16
    HIDDEN, D, K = 32, 32, 64  # cfg['model']['codebook']['k'] = 64

    key = jax.random.PRNGKey(0)
    kx, kp = jax.random.split(key)
    x = jax.random.normal(kx, (B, C, H, W), jnp.float32)
    params = init_params(kp, C, HIDDEN, D, K)

    fwd = jax.jit(vqvae_forward)
    x_h, (vq_loss, reco_loss), vq_config = fwd(params, x)
    jax.block_until_ready((x_h, vq_loss, reco_loss, vq_config["indices"]))

    assert x_h.shape == (B, C, H, W)
    assert vq_config["indices"].shape == (B, H // 2, W // 2)
    assert bool(jnp.isfinite(vq_loss)) and bool(jnp.isfinite(reco_loss))
    print("x_h shape:", x_h.shape, "vq_loss:", float(vq_loss), "reco_loss:", float(reco_loss))
    print("KERNEL_OK")
</pallas_src>

<mosaic_0001>
module attributes {stable_mosaic.version = 11 : i64} {
  func.func @_fused_vqvae_kernel(%arg0: i32, %arg1: memref<128x36xbf16, #tpu.memory_space<vmem>>, %arg2: memref<128x16xf32, #tpu.memory_space<vmem>>, %arg3: memref<36x32xbf16, #tpu.memory_space<vmem>>, %arg4: memref<1x32xf32, #tpu.memory_space<vmem>>, %arg5: memref<32x32xbf16, #tpu.memory_space<vmem>>, %arg6: memref<1x32xf32, #tpu.memory_space<vmem>>, %arg7: memref<64x32xf32, #tpu.memory_space<vmem>>, %arg8: memref<64x1xf32, #tpu.memory_space<vmem>>, %arg9: memref<32x32xbf16, #tpu.memory_space<vmem>>, %arg10: memref<1x32xf32, #tpu.memory_space<vmem>>, %arg11: memref<32x16xbf16, #tpu.memory_space<vmem>>, %arg12: memref<1x16xf32, #tpu.memory_space<vmem>>, %arg13: memref<128x16xf32, #tpu.memory_space<vmem>>, %arg14: memref<1x1x128xi32, #tpu.memory_space<vmem>>, %arg15: memref<1x1x1xf32, #tpu.memory_space<vmem>>, %arg16: memref<1x1x1xf32, #tpu.memory_space<vmem>>) attributes {dimension_semantics = [#tpu.dimension_semantics<parallel>], iteration_bounds = array<i64: 1>, scalar_prefetch = 0 : i64, scratch_operands = 0 : i64, tpu.core_type = #tpu.core_type<tc>, window_params = [{transform_indices = @transform_0, window_bounds = array<i64: 128, 36>}, {transform_indices = @transform_1, window_bounds = array<i64: 128, 16>}, {pipeline_mode = #tpu.pipeline_mode<synchronous>, transform_indices = @transform_2, window_bounds = array<i64: 36, 32>}, {pipeline_mode = #tpu.pipeline_mode<synchronous>, transform_indices = @transform_3, window_bounds = array<i64: 1, 32>}, {pipeline_mode = #tpu.pipeline_mode<synchronous>, transform_indices = @transform_4, window_bounds = array<i64: 32, 32>}, {pipeline_mode = #tpu.pipeline_mode<synchronous>, transform_indices = @transform_5, window_bounds = array<i64: 1, 32>}, {pipeline_mode = #tpu.pipeline_mode<synchronous>, transform_indices = @transform_6, window_bounds = array<i64: 64, 32>}, {pipeline_mode = #tpu.pipeline_mode<synchronous>, transform_indices = @transform_7, window_bounds = array<i64: 64, 1>}, {pipeline_mode = #tpu.pipeline_mode<synchronous>, transform_indices = @transform_8, window_bounds = array<i64: 32, 32>}, {pipeline_mode = #tpu.pipeline_mode<synchronous>, transform_indices = @transform_9, window_bounds = array<i64: 1, 32>}, {pipeline_mode = #tpu.pipeline_mode<synchronous>, transform_indices = @transform_10, window_bounds = array<i64: 32, 16>}, {pipeline_mode = #tpu.pipeline_mode<synchronous>, transform_indices = @transform_11, window_bounds = array<i64: 1, 16>}, {transform_indices = @transform_12, window_bounds = array<i64: 128, 16>}, {transform_indices = @transform_13, window_bounds = array<i64: 1, 1, 128>}, {transform_indices = @transform_14, window_bounds = array<i64: 1, 1, 1>}, {transform_indices = @transform_15, window_bounds = array<i64: 1, 1, 1>}]} {
    %c0 = arith.constant 0 : index
    %c0_0 = arith.constant 0 : index
    %0 = vector.load %arg1[%c0, %c0_0] : memref<128x36xbf16, #tpu.memory_space<vmem>>, vector<128x36xbf16>
    %c0_1 = arith.constant 0 : index
    %c0_2 = arith.constant 0 : index
    %1 = vector.load %arg3[%c0_1, %c0_2] : memref<36x32xbf16, #tpu.memory_space<vmem>>, vector<36x32xbf16>
    %cst = arith.constant dense<0.000000e+00> : vector<128x32xf32>
    %2 = tpu.matmul %0, %1, %cst {dimension_numbers = #tpu.dot_dimension_numbers<[1], [0], [0], [1], [0, 0, 1, 1], [], []>} : vector<128x36xbf16>, vector<36x32xbf16>, vector<128x32xf32> -> vector<128x32xf32>
    %c0_3 = arith.constant 0 : index
    %c0_4 = arith.constant 0 : index
    %3 = vector.load %arg4[%c0_3, %c0_4] : memref<1x32xf32, #tpu.memory_space<vmem>>, vector<1x32xf32>
    %4 = vector.broadcast %3 : vector<1x32xf32> to vector<128x32xf32>
    %5 = arith.addf %2, %4 : vector<128x32xf32>
    %cst_5 = arith.constant 0.000000e+00 : f32
    %6 = vector.broadcast %cst_5 : f32 to vector<128x32xf32>
    %7 = arith.maximumf %5, %6 : vector<128x32xf32>
    %8 = arith.truncf %7 : vector<128x32xf32> to vector<128x32xbf16>
    %c0_6 = arith.constant 0 : index
    %c0_7 = arith.constant 0 : index
    %9 = vector.load %arg5[%c0_6, %c0_7] : memref<32x32xbf16, #tpu.memory_space<vmem>>, vector<32x32xbf16>
    %cst_8 = arith.constant dense<0.000000e+00> : vector<128x32xf32>
    %10 = tpu.matmul %8, %9, %cst_8 {dimension_numbers = #tpu.dot_dimension_numbers<[1], [0], [0], [1], [0, 0, 1, 1], [], []>} : vector<128x32xbf16>, vector<32x32xbf16>, vector<128x32xf32> -> vector<128x32xf32>
    %c0_9 = arith.constant 0 : index
    %c0_10 = arith.constant 0 : index
    %11 = vector.load %arg6[%c0_9, %c0_10] : memref<1x32xf32, #tpu.memory_space<vmem>>, vector<1x32xf32>
    %12 = vector.broadcast %11 : vector<1x32xf32> to vector<128x32xf32>
    %13 = arith.addf %10, %12 : vector<128x32xf32>
    %c0_11 = arith.constant 0 : index
    %c0_12 = arith.constant 0 : index
    %14 = vector.load %arg7[%c0_11, %c0_12] : memref<64x32xf32, #tpu.memory_space<vmem>>, vector<64x32xf32>
    %15 = arith.truncf %14 : vector<64x32xf32> to vector<64x32xbf16>
    %16 = arith.truncf %13 : vector<128x32xf32> to vector<128x32xbf16>
    %cst_13 = arith.constant dense<0.000000e+00> : vector<64x128xf32>
    %17 = tpu.matmul %15, %16, %cst_13 {dimension_numbers = #tpu.dot_dimension_numbers<[1], [1], [0], [0], [0, 0, 1, 0], [], []>} : vector<64x32xbf16>, vector<128x32xbf16>, vector<64x128xf32> -> vector<64x128xf32>
    %c0_14 = arith.constant 0 : index
    %c0_15 = arith.constant 0 : index
    %18 = vector.load %arg8[%c0_14, %c0_15] : memref<64x1xf32, #tpu.memory_space<vmem>>, vector<64x1xf32>
    %cst_16 = arith.constant 2.000000e+00 : f32
    %19 = vector.broadcast %cst_16 : f32 to vector<64x128xf32>
    %20 = arith.mulf %19, %17 : vector<64x128xf32>
    %21 = vector.broadcast %18 : vector<64x1xf32> to vector<64x128xf32>
    %22 = arith.subf %21, %20 : vector<64x128xf32>
    %cst_17 = arith.constant dense<0x7F800000> : vector<128xf32>
    %23 = vector.multi_reduction <minimumf>, %22, %cst_17 [0] : vector<64x128xf32> to vector<128xf32>
    %24 = vector.shape_cast %23 : vector<128xf32> to vector<1x128xf32>
    %25 = tpu.iota {dimensions = array<i32: 0>} : vector<64x128xi32>
    %26 = vector.broadcast %24 : vector<1x128xf32> to vector<64x128xf32>
    %27 = arith.cmpf ole, %22, %26 : vector<64x128xf32>
    %c64_i32 = arith.constant 64 : i32
    %28 = vector.broadcast %c64_i32 : i32 to vector<64x128xi32>
    %29 = arith.select %27, %25, %28 : vector<64x128xi1>, vector<64x128xi32>
    %cst_18 = arith.constant dense<2147483647> : vector<128xi32>
    %30 = vector.multi_reduction <minsi>, %29, %cst_18 [0] : vector<64x128xi32> to vector<128xi32>
    %31 = vector.shape_cast %30 : vector<128xi32> to vector<1x128xi32>
    %32 = vector.broadcast %31 : vector<1x128xi32> to vector<64x128xi32>
    %33 = arith.cmpi eq, %25, %32 : vector<64x128xi32>
    %34 = arith.extui %33 : vector<64x128xi1> to vector<64x128xi32>
    %35 = arith.sitofp %34 : vector<64x128xi32> to vector<64x128xf32>
    %cst_19 = arith.constant dense<0.000000e+00> : vector<128x32xf32>
    %36 = tpu.matmul %35, %14, %cst_19 {dimension_numbers = #tpu.dot_dimension_numbers<[0], [0], [1], [1], [0, 1, 1, 1], [], []>} : vector<64x128xf32>, vector<64x32xf32>, vector<128x32xf32> -> vector<128x32xf32>
    %37 = arith.truncf %36 : vector<128x32xf32> to vector<128x32xbf16>
    %c0_20 = arith.constant 0 : index
    %c0_21 = arith.constant 0 : index
    %38 = vector.load %arg9[%c0_20, %c0_21] : memref<32x32xbf16, #tpu.memory_space<vmem>>, vector<32x32xbf16>
    %cst_22 = arith.constant dense<0.000000e+00> : vector<128x32xf32>
    %39 = tpu.matmul %37, %38, %cst_22 {dimension_numbers = #tpu.dot_dimension_numbers<[1], [0], [0], [1], [0, 0, 1, 1], [], []>} : vector<128x32xbf16>, vector<32x32xbf16>, vector<128x32xf32> -> vector<128x32xf32>
    %c0_23 = arith.constant 0 : index
    %c0_24 = arith.constant 0 : index
    %40 = vector.load %arg10[%c0_23, %c0_24] : memref<1x32xf32, #tpu.memory_space<vmem>>, vector<1x32xf32>
    %41 = vector.broadcast %40 : vector<1x32xf32> to vector<128x32xf32>
    %42 = arith.addf %39, %41 : vector<128x32xf32>
    %cst_25 = arith.constant 0.000000e+00 : f32
    %43 = vector.broadcast %cst_25 : f32 to vector<128x32xf32>
    %44 = arith.maximumf %42, %43 : vector<128x32xf32>
    %45 = arith.truncf %44 : vector<128x32xf32> to vector<128x32xbf16>
    %c0_26 = arith.constant 0 : index
    %c0_27 = arith.constant 0 : index
    %46 = vector.load %arg11[%c0_26, %c0_27] : memref<32x16xbf16, #tpu.memory_space<vmem>>, vector<32x16xbf16>
    %cst_28 = arith.constant dense<0.000000e+00> : vector<128x16xf32>
    %47 = tpu.matmul %45, %46, %cst_28 {dimension_numbers = #tpu.dot_dimension_numbers<[1], [0], [0], [1], [0, 0, 1, 1], [], []>} : vector<128x32xbf16>, vector<32x16xbf16>, vector<128x16xf32> -> vector<128x16xf32>
    %c0_29 = arith.constant 0 : index
    %c0_30 = arith.constant 0 : index
    %48 = vector.load %arg12[%c0_29, %c0_30] : memref<1x16xf32, #tpu.memory_space<vmem>>, vector<1x16xf32>
    %49 = vector.broadcast %48 : vector<1x16xf32> to vector<128x16xf32>
    %50 = arith.addf %47, %49 : vector<128x16xf32>
    %c0_31 = arith.constant 0 : index
    %c0_32 = arith.constant 0 : index
    %51 = vector.load %arg13[%c0_31, %c0_32] : memref<128x16xf32, #tpu.memory_space<vmem>>, vector<128x16xf32>
    tpu.vector_store %arg13[%c0_31, %c0_32], %50 {strides = array<i32>} : memref<128x16xf32, #tpu.memory_space<vmem>>, vector<128x16xf32>,
    %52 = vector.shape_cast %31 : vector<1x128xi32> to vector<1x1x128xi32>
    %c0_33 = arith.constant 0 : index
    %c0_34 = arith.constant 0 : index
    %c0_35 = arith.constant 0 : index
    %53 = vector.load %arg14[%c0_33, %c0_34, %c0_35] : memref<1x1x128xi32, #tpu.memory_space<vmem>>, vector<1x1x128xi32>
    tpu.vector_store %arg14[%c0_33, %c0_34, %c0_35], %52 {strides = array<i32>} : memref<1x1x128xi32, #tpu.memory_space<vmem>>, vector<1x1x128xi32>,
    %54 = arith.subf %13, %36 : vector<128x32xf32>
    %c0_36 = arith.constant 0 : index
    %c0_37 = arith.constant 0 : index
    %55 = vector.load %arg2[%c0_36, %c0_37] : memref<128x16xf32, #tpu.memory_space<vmem>>, vector<128x16xf32>
    %56 = arith.subf %50, %55 : vector<128x16xf32>
    %57 = arith.mulf %54, %54 : vector<128x32xf32>
    %58 = vector.shape_cast %57 : vector<128x32xf32> to vector<1x128x32xf32>
    %cst_38 = arith.constant dense<0.000000e+00> : vector<1xf32>
    %59 = vector.multi_reduction <add>, %58, %cst_38 [1, 2] : vector<1x128x32xf32> to vector<1xf32>
    %60 = vector.shape_cast %59 : vector<1xf32> to vector<1x1x1xf32>
    %61 = vector.extract %60[0, 0, 0] : f32 from vector<1x1x1xf32>
    %62 = vector.broadcast %61 : f32 to vector<1x1x1xf32>
    %c0_39 = arith.constant 0 : index
    %c0_40 = arith.constant 0 : index
    %c0_41 = arith.constant 0 : index
    %63 = vector.load %arg15[%c0_39, %c0_40, %c0_41] : memref<1x1x1xf32, #tpu.memory_space<vmem>>, vector<1x1x1xf32>
    tpu.vector_store %arg15[%c0_39, %c0_40, %c0_41], %62 {strides = array<i32>} : memref<1x1x1xf32, #tpu.memory_space<vmem>>, vector<1x1x1xf32>,
    %64 = arith.mulf %56, %56 : vector<128x16xf32>
    %65 = vector.shape_cast %64 : vector<128x16xf32> to vector<1x128x16xf32>
    %cst_42 = arith.constant dense<0.000000e+00> : vector<1xf32>
    %66 = vector.multi_reduction <add>, %65, %cst_42 [1, 2] : vector<1x128x16xf32> to vector<1xf32>
    %67 = vector.shape_cast %66 : vector<1xf32> to vector<1x1x1xf32>
    %68 = vector.extract %67[0, 0, 0] : f32 from vector<1x1x1xf32>
    %69 = vector.broadcast %68 : f32 to vector<1x1x1xf32>
    %c0_43 = arith.constant 0 : index
    %c0_44 = arith.constant 0 : index
    %c0_45 = arith.constant 0 : index
    %70 = vector.load %arg16[%c0_43, %c0_44, %c0_45] : memref<1x1x1xf32, #tpu.memory_space<vmem>>, vector<1x1x1xf32>
    tpu.vector_store %arg16[%c0_43, %c0_44, %c0_45], %69 {strides = array<i32>} : memref<1x1x1xf32, #tpu.memory_space<vmem>>, vector<1x1x1xf32>,
    return
  }
  func.func @transform_0(%arg0: i32) -> (i32, i32) {
    %c0_i32 = arith.constant 0 : i32
    %c0_i32_0 = arith.constant 0 : i32
    return %arg0, %c0_i32 : i32, i32
  }
  func.func @transform_1(%arg0: i32) -> (i32, i32) {
    %c0_i32 = arith.constant 0 : i32
    %c0_i32_0 = arith.constant 0 : i32
    return %arg0, %c0_i32 : i32, i32
  }
  func.func @transform_2(%arg0: i32) -> (i32, i32) {
    %c0_i32 = arith.constant 0 : i32
    %c0_i32_0 = arith.constant 0 : i32
    %c0_i32_1 = arith.constant 0 : i32
    return %c0_i32, %c0_i32_0 : i32, i32
  }
  func.func @transform_3(%arg0: i32) -> (i32, i32) {
    %c0_i32 = arith.constant 0 : i32
    %c0_i32_0 = arith.constant 0 : i32
    %c0_i32_1 = arith.constant 0 : i32
    return %c0_i32, %c0_i32_0 : i32, i32
  }
  func.func @transform_4(%arg0: i32) -> (i32, i32) {
    %c0_i32 = arith.constant 0 : i32
    %c0_i32_0 = arith.constant 0 : i32
    %c0_i32_1 = arith.constant 0 : i32
    return %c0_i32, %c0_i32_0 : i32, i32
  }
  func.func @transform_5(%arg0: i32) -> (i32, i32) {
    %c0_i32 = arith.constant 0 : i32
    %c0_i32_0 = arith.constant 0 : i32
    %c0_i32_1 = arith.constant 0 : i32
    return %c0_i32, %c0_i32_0 : i32, i32
  }
  func.func @transform_6(%arg0: i32) -> (i32, i32) {
    %c0_i32 = arith.constant 0 : i32
    %c0_i32_0 = arith.constant 0 : i32
    %c0_i32_1 = arith.constant 0 : i32
    return %c0_i32, %c0_i32_0 : i32, i32
  }
  func.func @transform_7(%arg0: i32) -> (i32, i32) {
    %c0_i32 = arith.constant 0 : i32
    %c0_i32_0 = arith.constant 0 : i32
    %c0_i32_1 = arith.constant 0 : i32
    return %c0_i32, %c0_i32_0 : i32, i32
  }
  func.func @transform_8(%arg0: i32) -> (i32, i32) {
    %c0_i32 = arith.constant 0 : i32
    %c0_i32_0 = arith.constant 0 : i32
    %c0_i32_1 = arith.constant 0 : i32
    return %c0_i32, %c0_i32_0 : i32, i32
  }
  func.func @transform_9(%arg0: i32) -> (i32, i32) {
    %c0_i32 = arith.constant 0 : i32
    %c0_i32_0 = arith.constant 0 : i32
    %c0_i32_1 = arith.constant 0 : i32
    return %c0_i32, %c0_i32_0 : i32, i32
  }
  func.func @transform_10(%arg0: i32) -> (i32, i32) {
    %c0_i32 = arith.constant 0 : i32
    %c0_i32_0 = arith.constant 0 : i32
    %c0_i32_1 = arith.constant 0 : i32
    return %c0_i32, %c0_i32_0 : i32, i32
  }
  func.func @transform_11(%arg0: i32) -> (i32, i32) {
    %c0_i32 = arith.constant 0 : i32
    %c0_i32_0 = arith.constant 0 : i32
    %c0_i32_1 = arith.constant 0 : i32
    return %c0_i32, %c0_i32_0 : i32, i32
  }
  func.func @transform_12(%arg0: i32) -> (i32, i32) {
    %c0_i32 = arith.constant 0 : i32
    %c0_i32_0 = arith.constant 0 : i32
    return %arg0, %c0_i32 : i32, i32
  }
  func.func @transform_13(%arg0: i32) -> (i32, i32, i32) {
    %c0_i32 = arith.constant 0 : i32
    %c0_i32_0 = arith.constant 0 : i32
    %c0_i32_1 = arith.constant 0 : i32
    return %arg0, %c0_i32, %c0_i32_0 : i32, i32, i32
  }
  func.func @transform_14(%arg0: i32) -> (i32, i32, i32) {
    %c0_i32 = arith.constant 0 : i32
    %c0_i32_0 = arith.constant 0 : i32
    %c0_i32_1 = arith.constant 0 : i32
    return %arg0, %c0_i32, %c0_i32_0 : i32, i32, i32
  }
  func.func @transform_15(%arg0: i32) -> (i32, i32, i32) {
    %c0_i32 = arith.constant 0 : i32
    %c0_i32_0 = arith.constant 0 : i32
    %c0_i32_1 = arith.constant 0 : i32
    return %arg0, %c0_i32, %c0_i32_0 : i32, i32, i32
  }
}

</mosaic_0001>

<bundles_post_ra>
// kernel: vqvae_forward.1
= control target key start
LH: loop header
LB: loop body
LE: loop exit
PB: predicated region body
PF: predicated region fallthrough
CT: control target
= control target key end

     0   :  { %21 = vsyncpa [#allocation3], 0  ;;  %vm131_vm0 = vcmask 293888   ;;  %vm156_vm1 = vcmask 1041408   ;;  %s2406_s0 = inlined_call_operand.vmem [shape: bf16[128,36], index: 0, kind: input, shape index: {}]   ;;  %s2407_s1 = inlined_call_operand.vmem [shape: f32[128,16], index: 1, kind: input, shape index: {}]   ;;  %s2408_s2 = inlined_call_operand.vmem [shape: bf16[36,32], index: 2, kind: input, shape index: {}]   ;;  %s2409_s3 = inlined_call_operand.vmem [shape: f32[1,32], index: 3, kind: input, shape index: {}]   ;;  %s2410_s4 = inlined_call_operand.vmem [shape: bf16[32,32], index: 4, kind: input, shape index: {}]   ;;  %s2411_s5 = inlined_call_operand.vmem [shape: f32[1,32], index: 5, kind: input, shape index: {}]   ;;  %s2412_s6 = inlined_call_operand.vmem [shape: f32[64,32], index: 6, kind: input, shape index: {}]   ;;  %s2413_s7 = inlined_call_operand.vmem [shape: f32[64,1], index: 7, kind: input, shape index: {}]   ;;  %s2414_s8 = inlined_call_operand.vmem [shape: bf16[32,32], index: 8, kind: input, shape index: {}]   ;;  %s2415_s9 = inlined_call_operand.vmem [shape: f32[1,32], index: 9, kind: input, shape index: {}]   ;;  %s2416_s10 = inlined_call_operand.vmem [shape: bf16[32,16], index: 10, kind: input, shape index: {}]   ;;  %s2417_s11 = inlined_call_operand.vmem [shape: f32[1,16], index: 11, kind: input, shape index: {}]   ;;  %s2418_s12 = inlined_call_operand.vmem [shape: f32[128,16], index: 12, kind: output, shape index: {0}]   ;;  %s2419_s13 = inlined_call_operand.vmem [shape: s32[1,1,128], index: 13, kind: output, shape index: {1}]   ;;  %s2420_s14 = inlined_call_operand.hbm [shape: f32[1,1,1], index: 14, kind: output, shape index: {2}]   ;;  %s2421_s15 = inlined_call_operand.hbm [shape: f32[1,1,1], index: 15, kind: output, shape index: {3}]  }
   0x1   :  { %v1800_v0 = vld [vmem:[%s2408_s2] sm:$0xff]   ;;  %v1801_v1 = vld [vmem:[%s2408_s2 + $0x8] sm:$0xff]   ;;  %v1802_v2 = vld [vmem:[%s2408_s2 + $0x10] ss:$0 sps:$4 sm:$0x33]  }
   0x2   :  { %1619 = vmatprep.subr.bf16.mxu0 %v1800_v0  ;;  %v1803_v3 = vld [vmem:[%s2406_s0] sm:$0xff]   ;;  %v158_v4 = vsel %vm156_vm1, %v1802_v2, 0  ;;  %v1804_v5 = vld [vmem:[%s2406_s0 + $0x8] sm:$0xff]   ;;  %v1805_v6 = vld [vmem:[%s2406_s0 + $0x10] sm:$0xff]  }
   0x3   :  { %1620 = vmatpush3.bf16.msra.mxu0 %v1800_v0  ;;  %1625 = vmatprep.mubr.msk.bf16.mxu0 %vm131_vm0, %v1803_v3 }
   0x4   :  { %1621 = vmatprep.subr.bf16.mxu0 %v1801_v1 }
   0x7   :  { %1622 = vmatpush3.bf16.msra.mxu0 %v1801_v1 }
   0x8   :  { %1781 = vmatprep.subr.msk.bf16.mxu0 %vm156_vm1, %v1802_v2 }
   0xb   :  { %1624 = vmatpush3.bf16.msra.mxu0 %v158_v4 }
   0xe   :  { %1626 = vmatmul.mubr.msk.bf16.vlgmr.msra.gmra.mrb[0].mxu0 %vm131_vm0, %v1804_v5 }
   0xf   :  { %22 = vsyncpa [#allocation5], 0  ;;  %1629 = vmatprep.mubr.msk.bf16.mxu0 %vm131_vm0, %v1805_v6  ;;  %v1806_v7 = vld [vmem:[%s2406_s0 + $0x18] sm:$0xff]   ;;  %v1807_v8 = vld [vmem:[%s2406_s0 + $0x20] sm:$0xff]   ;;  %vm304_vm2 = vcmask 261120  }
  0x10   :  { %v1808_v9 = vld [vmem:[%s2406_s0 + $0x28] sm:$0xff]   ;;  %v1809_v10 = vld [vmem:[%s2406_s0 + $0x30] sm:$0xff]   ;;  %v1810_v11 = vld [vmem:[%s2406_s0 + $0x38] sm:$0xff]  }
  0x11   :  { %v1811_v12 = vld [vmem:[%s2410_s4] sm:$0xff]   ;;  %v1812_v13 = vld [vmem:[%s2410_s4 + $0x8] sm:$0xff]  }
  0x12   :  { %1641 = vmatprep.subr.bf16.mxu1 %v1811_v12  ;;  %v1461_v14 = vld [vmem:[%s2409_s3] ss:$0 sm:$0xff] }
  0x13   :  { %1642 = vmatpush3.bf16.msra.mxu1 %v1811_v12 }
  0x14   :  { %1643 = vmatprep.subr.bf16.mxu1 %v1812_v13 }
  0x16   :  { %1630 = vmatmul.mubr.msk.bf16.gmra.mrb[4].mxu0 %vm131_vm0, %v1806_v7  ;;  %v426_v7 = vld [vmem:[%s2412_s6] sm:$0xff] }
  0x17   :  { %1633 = vmatprep.mubr.msk.bf16.mxu0 %vm131_vm0, %v1807_v8  ;;  %1644 = vmatpush3.bf16.msra.mxu1 %v1812_v13  ;;  %v427_v8 = vld [vmem:[%s2412_s6 + $0x8] sm:$0xff]  ;;  %v430_v13 = vld [vmem:[%s2412_s6 + $0x20] sm:$0xff] }
  0x1e   :  { %1634 = vmatmul.mubr.msk.bf16.gmra.mrb[8].mxu0 %vm131_vm0, %v1808_v9  ;;  %v428_v9 = vld [vmem:[%s2412_s6 + $0x10] sm:$0xff] }
  0x1f   :  { %1637 = vmatprep.mubr.msk.bf16.mxu0 %vm131_vm0, %v1809_v10  ;;  %v434_v10 = vpack.c.bf16 %v427_v8, %v426_v7 }
  0x21   :  { %1766 = vmatprep.subr.bf16.mxu0 %v434_v10 }
  0x22   :  { %1768 = vmatpush3.bf16.msra.mxu0 %v434_v10 }
  0x26   :  { %1638 = vmatmul.mubr.msk.bf16.gmra.mrb[12].mxu0 %vm131_vm0, %v1810_v11  ;;  %v429_v11 = vld [vmem:[%s2412_s6 + $0x18] sm:$0xff] }
  0x27   :  { %v2020_v12 = vpack.c.bf16 %v429_v11, %v428_v9 }
  0x29   :  { %1770 = vmatprep.subr.bf16.mxu0 %v2020_v12 }
  0x2a   :  { %1772 = vmatpush3.bf16.msra.mxu0 %v2020_v12 }
  0xe1   :  { %v1627_v15 = vpop.f32.mrb[0].mxu0 }
  0xe2   :  { %v203_v16 = vadd.f32 %v1627_v15, %v1461_v14  ;;  %v194_v17 = vpop.f32.mrb[1].mxu0 }
  0xe3   :  { %v195_v18 = vadd.f32 %v1461_v14, %v194_v17  ;;  %v1628_v19 = vpop.f32.mrb[2].mxu0  ;;  %v433_v17 = vld [vmem:[%s2412_s6 + $0x38] sm:$0xff] }
  0xe4   :  { %v206_v20 = vadd.f32 %v1628_v19, %v1461_v14  ;;  %v197_v21 = vpop.f32.mrb[3].mxu0  ;;  %v259_v23 = vmax.f32 %v203_v16, 0.0  ;;  %v432_v16 = vld [vmem:[%s2412_s6 + $0x30] sm:$0xff] }
  0xe5   :  { %v198_v22 = vadd.f32 %v1461_v14, %v197_v21  ;;  %v257_v25 = vmax.f32 %v195_v18, 0.0  ;;  %v2039_v18 = vpack.c.bf16 %v433_v17, %v432_v16  ;;  %v549_v19 = vld [vmem:[%s2413_s7 + $0x10] sm:$0xff]  ;;  %v1865_v21 = vmov 0  }
  0xe6   :  { %v260_v24 = vmax.f32 %v206_v20, 0.0  ;;  %v547_v20 = vld [vmem:[%s2413_s7] sm:$0xff]  ;;  %1799 = vset.pattern.permute.xlu1 %v1865_v21  ;;  %1798 = vset.pattern.permute.xlu0 %v1865_v21 }
  0xe7   :  { %v258_v26 = vmax.f32 %v198_v22, 0.0  ;;  %575 = vperm.xlu1 %1799, %v549_v19   ;;  %565 = vperm.xlu0 %1798, %v547_v20   ;;  %v550_v22 = vld [vmem:[%s2413_s7 + $0x18] sm:$0xff] }
  0xe8   :  { %v274_v27 = vpack.c.bf16 %v260_v24, %v259_v23  ;;  %v548_v23 = vld [vmem:[%s2413_s7 + $0x8] sm:$0xff] }
  0xe9   :  { %v1631_v28 = vpop.f32.mrb[4].mxu0  ;;  %v273_v29 = vpack.c.bf16 %v258_v26, %v257_v25  ;;  %v552_v24 = vld [vmem:[%s2413_s7 + $0x28] sm:$0xff]  ;;  %v551_v25 = vld [vmem:[%s2413_s7 + $0x20] sm:$0xff]  ;;  %v554_v26 = vld [vmem:[%s2413_s7 + $0x38] sm:$0xff] }
  0xea   :  { %v219_v30 = vadd.f32 %v1631_v28, %v1461_v14  ;;  %v210_v31 = vpop.f32.mrb[5].mxu0 }
  0xeb   :  { %v211_v32 = vadd.f32 %v1461_v14, %v210_v31  ;;  %1645 = vmatprep.mubr.msk.bf16.mxu1 %vm304_vm2, %v273_v29  ;;  %v1632_v33 = vpop.f32.mrb[6].mxu0  ;;  %580 = vperm.xlu1 %1799, %v550_v22   ;;  %v1481_v29 = vld [vmem:[%s2411_s5] ss:$0 sm:$0xff] }
  0xec   :  { %v263_v34 = vmax.f32 %v219_v30, 0.0  ;;  %v222_v35 = vadd.f32 %v1632_v33, %v1461_v14  ;;  %1646 = vmatmul.mubr.msk.bf16.vlgmr.msra.gmra.mrb[0].mxu1 %vm304_vm2, %v274_v27  ;;  %v213_v36 = vpop.f32.mrb[7].mxu0  ;;  %570 = vperm.xlu0 %1798, %v548_v23   ;;  %v553_v27 = vld [vmem:[%s2413_s7 + $0x30] sm:$0xff] }
  0xed   :  { %v261_v37 = vmax.f32 %v211_v32, 0.0  ;;  %v214_v38 = vadd.f32 %v1461_v14, %v213_v36 }
  0xee   :  { %v264_v39 = vmax.f32 %v222_v35, 0.0 }
  0xef   :  { %v262_v40 = vmax.f32 %v214_v38, 0.0  ;;  %590 = vperm.xlu1 %1799, %v552_v24  }
  0xf0   :  { %v276_v41 = vpack.c.bf16 %v264_v39, %v263_v34  ;;  %585 = vperm.xlu0 %1798, %v551_v25  }
  0xf1   :  { %v275_v42 = vpack.c.bf16 %v262_v40, %v261_v37  ;;  %v1635_v43 = vpop.f32.mrb[8].mxu0 }
  0xf2   :  { %v235_v44 = vadd.f32 %v1635_v43, %v1461_v14  ;;  %v226_v45 = vpop.f32.mrb[9].mxu0 }
  0xf3   :  { %1649 = vmatprep.mubr.msk.bf16.mxu1 %vm304_vm2, %v275_v42  ;;  %v227_v46 = vadd.f32 %v1461_v14, %v226_v45  ;;  %v1636_v47 = vpop.f32.mrb[10].mxu0  ;;  %600 = vperm.xlu1 %1799, %v554_v26  }
  0xf4   :  { %1650 = vmatmul.mubr.msk.bf16.gmra.mrb[4].mxu1 %vm304_vm2, %v276_v41  ;;  %v267_v48 = vmax.f32 %v235_v44, 0.0  ;;  %v238_v49 = vadd.f32 %v1636_v47, %v1461_v14  ;;  %v229_v50 = vpop.f32.mrb[11].mxu0  ;;  %595 = vperm.xlu0 %1798, %v553_v27  }
  0xf5   :  { %v265_v51 = vmax.f32 %v227_v46, 0.0  ;;  %v230_v52 = vadd.f32 %v1461_v14, %v229_v50 }
  0xf6   :  { %v268_v53 = vmax.f32 %v238_v49, 0.0 }
  0xf7   :  { %v266_v54 = vmax.f32 %v230_v52, 0.0 }
  0xf8   :  { %v278_v55 = vpack.c.bf16 %v268_v53, %v267_v48 }
  0xf9   :  { %v277_v56 = vpack.c.bf16 %v266_v54, %v265_v51  ;;  %v1639_v57 = vpop.f32.mrb[12].mxu0 }
  0xfa   :  { %v251_v58 = vadd.f32 %v1639_v57, %v1461_v14  ;;  %v242_v59 = vpop.f32.mrb[13].mxu0 }
  0xfb   :  { %1653 = vmatprep.mubr.msk.bf16.mxu1 %vm304_vm2, %v277_v56  ;;  %v243_v60 = vadd.f32 %v1461_v14, %v242_v59  ;;  %v1640_v61 = vpop.f32.mrb[14].mxu0 }
  0xfc   :  { %1654 = vmatmul.mubr.msk.bf16.gmra.mrb[8].mxu1 %vm304_vm2, %v278_v55  ;;  %v271_v62 = vmax.f32 %v251_v58, 0.0  ;;  %v254_v63 = vadd.f32 %v1640_v61, %v1461_v14  ;;  %v245_v0 = vpop.f32.mrb[15].mxu0 }
  0xfd   :  { %v269_v1 = vmax.f32 %v243_v60, 0.0  ;;  %v246_v2 = vadd.f32 %v1461_v14, %v245_v0  ;;  %v431_v14 = vld [vmem:[%s2412_s6 + $0x28] sm:$0xff] }
  0xfe   :  { %v272_v3 = vmax.f32 %v254_v63, 0.0  ;;  %v2029_v15 = vpack.c.bf16 %v431_v14, %v430_v13 }
  0xff   :  { %v270_v4 = vmax.f32 %v246_v2, 0.0 }
 0x100   :  { %v280_v5 = vpack.c.bf16 %v272_v3, %v271_v62  ;;  %1774 = vmatprep.subr.bf16.mxu0 %v2029_v15 }
 0x101   :  { %v279_v6 = vpack.c.bf16 %v270_v4, %v269_v1  ;;  %1776 = vmatpush3.bf16.msra.mxu0 %v2029_v15 }
 0x102   :  { %1778 = vmatprep.subr.bf16.mxu0 %v2039_v18 }
 0x103   :  { %1657 = vmatprep.mubr.msk.bf16.mxu1 %vm304_vm2, %v279_v6 }
 0x104   :  { %1658 = vmatmul.mubr.msk.bf16.gmra.mrb[12].mxu1 %vm304_vm2, %v280_v5 }
 0x105   :  { %1677 = vmatprep.mubr.msk.bf16.mxu1 %vm304_vm2, %v434_v10  ;;  %1780 = vmatpush3.bf16.msra.mxu0 %v2039_v18 }
 0x166   :  { %v566_v14 = vpop.permute.xlu0 %565  ;;  %v576_v16 = vpop.permute.xlu1 %575 }
 0x16a   :  { %v581_v19 = vpop.permute.xlu1 %580 }
 0x16b   :  { %v571_v17 = vpop.permute.xlu0 %570 }
 0x16e   :  { %v591_v25 = vpop.permute.xlu1 %590 }
 0x16f   :  { %v586_v24 = vpop.permute.xlu0 %585 }
 0x1bf   :  { %v1647_v28 = vpop.f32.mrb[0].mxu1 }
 0x1c0   :  { %v363_v30 = vpop.f32.mrb[1].mxu1  ;;  %v2077_v36 = vadd.f32 %v1647_v28, %v1481_v29 }
 0x1c1   :  { %v1648_v31 = vpop.f32.mrb[2].mxu1  ;;  %v2071_v33 = vadd.f32 %v1481_v29, %v363_v30 }
 0x1c2   :  { %v366_v32 = vpop.f32.mrb[3].mxu1  ;;  %v2073_v34 = vadd.f32 %v1648_v31, %v1481_v29 }
 0x1c3   :  { %v2075_v35 = vadd.f32 %v1481_v29, %v366_v32 }
 0x1c4   :  { %v439_v38 = vpack.c.bf16 %v2073_v34, %v2077_v36 }
 0x1c5   :  { %v438_v37 = vpack.c.bf16 %v2075_v35, %v2071_v33 }
 0x1c6   :  { %v462_v47 = vsel %vm304_vm2, %v439_v38, 0 }
 0x1c7   :  { %1782 = vmatprep.subr.msk.bf16.mxu1 %vm304_vm2, %v438_v37  ;;  %v1651_v39 = vpop.f32.mrb[4].mxu1  ;;  %v459_v40 = vsel %vm304_vm2, %v438_v37, 0 }
 0x1c8   :  { %1662 = vmatpush3.bf16.xpose.msra.mxu1 %v459_v40  ;;  %v379_v41 = vpop.f32.mrb[5].mxu1  ;;  %v2094_v52 = vadd.f32 %v1651_v39, %v1481_v29 }
 0x1c9   :  { %v2085_v42 = vadd.f32 %v1481_v29, %v379_v41  ;;  %1783 = vmatprep.subr.msk.bf16.mxu1 %vm304_vm2, %v439_v38  ;;  %v1652_v43 = vpop.f32.mrb[6].mxu1  ;;  %v601_v41 = vpop.permute.xlu1 %600 }
 0x1ca   :  { %v382_v44 = vpop.f32.mrb[7].mxu1  ;;  %v2096_v53 = vadd.f32 %v1652_v43, %v1481_v29 }
 0x1cb   :  { %v2088_v45 = vadd.f32 %v1481_v29, %v382_v44 }
 0x1cc   :  { %v441_v54 = vpack.c.bf16 %v2096_v53, %v2094_v52 }
 0x1cd   :  { %v440_v46 = vpack.c.bf16 %v2088_v45, %v2085_v42 }
 0x1ce   :  { %v468_v63 = vsel %vm304_vm2, %v441_v54, 0 }
 0x1cf   :  { %v1655_v48 = vpop.f32.mrb[8].mxu1  ;;  %v465_v55 = vsel %vm304_vm2, %v440_v46, 0 }
 0x1d0   :  { %1664 = vmatpush3.bf16.xpose.msra.mxu1 %v462_v47  ;;  %v395_v49 = vpop.f32.mrb[9].mxu1  ;;  %v2110_v0 = vadd.f32 %v1655_v48, %v1481_v29 }
 0x1d1   :  { %1784 = vmatprep.subr.msk.bf16.mxu1 %vm304_vm2, %v440_v46  ;;  %v1656_v50 = vpop.f32.mrb[10].mxu1  ;;  %v2101_v58 = vadd.f32 %v1481_v29, %v395_v49 }
 0x1d2   :  { %v398_v51 = vpop.f32.mrb[11].mxu1  ;;  %v2112_v1 = vadd.f32 %v1656_v50, %v1481_v29 }
 0x1d3   :  { %v2104_v59 = vadd.f32 %v1481_v29, %v398_v51 }
 0x1d4   :  { %v443_v2 = vpack.c.bf16 %v2112_v1, %v2110_v0 }
 0x1d5   :  { %v442_v62 = vpack.c.bf16 %v2104_v59, %v2101_v58 }
 0x1d6   :  { %v474_v7 = vsel %vm304_vm2, %v443_v2, 0 }
 0x1d7   :  { %v1659_v56 = vpop.f32.mrb[12].mxu1  ;;  %v471_v3 = vsel %vm304_vm2, %v442_v62, 0 }
 0x1d8   :  { %1666 = vmatpush3.bf16.xpose.msra.mxu1 %v465_v55  ;;  %v411_v57 = vpop.f32.mrb[13].mxu1  ;;  %v2126_v8 = vadd.f32 %v1659_v56, %v1481_v29 }
 0x1d9   :  { %1785 = vmatprep.subr.msk.bf16.mxu1 %vm304_vm2, %v441_v54  ;;  %v1660_v60 = vpop.f32.mrb[14].mxu1  ;;  %v2117_v4 = vadd.f32 %v1481_v29, %v411_v57 }
 0x1da   :  { %v414_v61 = vpop.f32.mrb[15].mxu1  ;;  %v2128_v9 = vadd.f32 %v1660_v60, %v1481_v29 }
 0x1db   :  { %v2120_v5 = vadd.f32 %v1481_v29, %v414_v61 }
 0x1dc   :  { %v445_v10 = vpack.c.bf16 %v2128_v9, %v2126_v8 }
 0x1dd   :  { %v444_v6 = vpack.c.bf16 %v2120_v5, %v2117_v4 }
 0x1de   :  { %v480_v13 = vsel %vm304_vm2, %v445_v10, 0 }
 0x1df   :  { %v477_v11 = vsel %vm304_vm2, %v444_v6, 0 }
 0x1e0   :  { %1668 = vmatpush3.bf16.xpose.msra.mxu1 %v468_v63 }
 0x1e1   :  { %1786 = vmatprep.subr.msk.bf16.mxu1 %vm304_vm2, %v442_v62 }
 0x1e8   :  { %1670 = vmatpush3.bf16.xpose.msra.mxu1 %v471_v3 }
 0x1e9   :  { %1787 = vmatprep.subr.msk.bf16.mxu1 %vm304_vm2, %v443_v2  ;;  %v624_v2 = vlaneseq }
 0x1f0   :  { %1672 = vmatpush3.bf16.xpose.msra.mxu1 %v474_v7  ;;  %v625_v7 = vshrl.u32 %v624_v2, 7 }
 0x1f1   :  { %1788 = vmatprep.subr.msk.bf16.mxu1 %vm304_vm2, %v444_v6 }
 0x1f8   :  { %1674 = vmatpush3.bf16.xpose.msra.mxu1 %v477_v11 }
 0x1f9   :  { %1789 = vmatprep.subr.msk.bf16.mxu1 %vm304_vm2, %v445_v10 }
 0x200   :  { %1676 = vmatpush3.bf16.xpose.msra.mxu1 %v480_v13  ;;  %v626_v13 = vadd.s32 8, %v625_v7 }
 0x207   :  { %1678 = vmatmul.mubr.msk.bf16.vlgmr.msra.gmra.mrb[16].mxu1 %vm304_vm2, %v2020_v12 }
 0x208   :  { %1681 = vmatprep.mubr.msk.bf16.mxu1 %vm304_vm2, %v2029_v15  ;;  %v596_v15 = vpop.permute.xlu0 %595 }
 0x20f   :  { %1682 = vmatmul.mubr.msk.bf16.gmra.mrb[20].mxu1 %vm304_vm2, %v2039_v18 }
 0x2da   :  { %v1679_v20 = vpop.f32.mrb[16].mxu1 }
 0x2db   :  { %v516_v21 = vpop.f32.mrb[17].mxu1  ;;  %v557_v26 = vmul.f32 2.0, %v1679_v20  ;;  %v2141_v20 = vadd.s32 48, %v625_v7 }
 0x2dc   :  { %v1680_v22 = vpop.f32.mrb[18].mxu1  ;;  %v555_v27 = vmul.f32 2.0, %v516_v21  ;;  %v2143_v21 = vadd.s32 56, %v625_v7 }
 0x2dd   :  { %v519_v23 = vpop.f32.mrb[19].mxu1  ;;  %v558_v12 = vmul.f32 2.0, %v1680_v22  ;;  %v605_v37 = vsub.f32 %v576_v16, %v557_v26  ;;  %v628_v16 = vadd.s32 24, %v625_v7 }
 0x2de   :  { %v556_v31 = vmul.f32 2.0, %v519_v23  ;;  %v603_v43 = vsub.f32 %v566_v14, %v555_v27  ;;  %v627_v14 = vadd.s32 16, %v625_v7 }
 0x2df   :  { %v606_v47 = vsub.f32 %v581_v19, %v558_v12  ;;  %v629_v19 = vadd.s32 32, %v625_v7 }
 0x2e0   :  { %v604_v50 = vsub.f32 %v571_v17, %v556_v31  ;;  %v630_v17 = vadd.s32 40, %v625_v7 }
 0x2e2   :  { %v1683_v28 = vpop.f32.mrb[20].mxu1 }
 0x2e3   :  { %v561_v29 = vmul.f32 2.0, %v1683_v28  ;;  %v532_v30 = vpop.f32.mrb[21].mxu1 }
 0x2e4   :  { %v559_v32 = vmul.f32 2.0, %v532_v30  ;;  %v1684_v18 = vpop.f32.mrb[22].mxu1 }
 0x2e5   :  { %v609_v38 = vsub.f32 %v596_v15, %v561_v29  ;;  %v562_v39 = vmul.f32 2.0, %v1684_v18  ;;  %v535_v40 = vpop.f32.mrb[23].mxu1 }
 0x2e6   :  { %v607_v44 = vsub.f32 %v586_v24, %v559_v32  ;;  %v560_v46 = vmul.f32 2.0, %v535_v40 }
 0x2e7   :  { %v613_v48 = vmin.f32 %v605_v37, %v609_v38  ;;  %v610_v49 = vsub.f32 %v601_v41, %v562_v39 }
 0x2e8   :  { %v611_v51 = vmin.f32 %v603_v43, %v607_v44  ;;  %v608_v54 = vsub.f32 %v591_v25, %v560_v46  ;;  %v1866_v46 = vmov 0.0  }
 0x2e9   :  { %v614_v55 = vmin.f32 %v606_v47, %v610_v49 }
 0x2ea   :  { %v612_v56 = vmin.f32 %v604_v50, %v608_v54 }
 0x2eb   :  { %v616_v57 = vmin.f32 %v613_v48, %v614_v55 }
 0x2ec   :  { %v615_v60 = vmin.f32 %v611_v51, %v612_v56 }
 0x2ee   :  { %v617_v61 = vmin.f32 %v615_v60, %v616_v57 }
 0x2f0   :  { %v618_v62 = vrot.slane %v617_v61, 4 }
 0x2f2   :  { %v619_v63 = vmin.f32 %v617_v61, %v618_v62 }
 0x2f4   :  { %v620_v3 = vrot.slane %v619_v63, 2 }
 0x2f6   :  { %v621_v6 = vmin.f32 %v619_v63, %v620_v3 }
 0x2f8   :  { %v622_v10 = vrot.slane %v621_v6, 1 }
 0x2fa   :  { %v623_v11 = vmin.f32 %v621_v6, %v622_v10 }
 0x2fc   :  { %vm633_vm3 = vcmp.le.f32.partialorder %v603_v43, %v623_v11  ;;  %vm634_vm4 = vcmp.le.f32.partialorder %v604_v50, %v623_v11  ;;  %vm635_vm5 = vcmp.le.f32.partialorder %v605_v37, %v623_v11  ;;  %vm636_vm6 = vcmp.le.f32.partialorder %v606_v47, %v623_v11 }
 0x2fd   :  { %vm637_vm7 = vcmp.le.f32.partialorder %v607_v44, %v623_v11  ;;  %vm638_vm8 = vcmp.le.f32.partialorder %v608_v54, %v623_v11  ;;  %vm639_vm9 = vcmp.le.f32.partialorder %v609_v38, %v623_v11  ;;  %vm640_vm10 = vcmp.le.f32.partialorder %v610_v49, %v623_v11 }
 0x2fe   :  { %v641_v22 = vsel %vm633_vm3, %v625_v7, 64  ;;  %v642_v23 = vsel %vm634_vm4, %v626_v13, 64  ;;  %v643_v24 = vsel %vm635_vm5, %v627_v14, 64  ;;  %v644_v25 = vsel %vm636_vm6, %v628_v16, 64 }
 0x2ff   :  { %v645_v26 = vsel %vm637_vm7, %v629_v19, 64  ;;  %v646_v27 = vsel %vm638_vm8, %v630_v17, 64  ;;  %v647_v28 = vsel %vm639_vm9, %v2141_v20, 64  ;;  %v648_v12 = vsel %vm640_vm10, %v2143_v21, 64 }
 0x300   :  { %vm649_vm11 = vcmp.lt.s32.totalorder %v641_v22, %v645_v26  ;;  %vm651_vm12 = vcmp.lt.s32.totalorder %v642_v23, %v646_v27  ;;  %vm653_vm13 = vcmp.lt.s32.totalorder %v643_v24, %v647_v28  ;;  %vm655_vm14 = vcmp.lt.s32.totalorder %v644_v25, %v648_v12 }
 0x301   :  { %v650_v29 = vsel %vm649_vm11, %v641_v22, %v645_v26  ;;  %v652_v30 = vsel %vm651_vm12, %v642_v23, %v646_v27  ;;  %v654_v15 = vsel %vm653_vm13, %v643_v24, %v647_v28  ;;  %v656_v31 = vsel %vm655_vm14, %v644_v25, %v648_v12 }
 0x302   :  { %vm657_vm15 = vcmp.lt.s32.totalorder %v650_v29, %v652_v30  ;;  %vm659_vm0 = vcmp.lt.s32.totalorder %v654_v15, %v656_v31  ;;  %vm728_vm14 = vcmask 523264  }
 0x303   :  { %v658_v32 = vsel %vm657_vm15, %v650_v29, %v652_v30  ;;  %v660_v18 = vsel %vm659_vm0, %v654_v15, %v656_v31  ;;  %vm1365_vm15 = vcmask 0   ;;  %vm1242_vm0 = vcmask 130048  }
 0x304   :  { %vm661_vm1 = vcmp.lt.s32.totalorder %v658_v32, %v660_v18 }
 0x305   :  { %v662_v37 = vsel %vm661_vm1, %v658_v32, %v660_v18 }
 0x306   :  { %v663_v38 = vrot.slane %v662_v37, 4 }
 0x308   :  { %vm664_vm3 = vcmp.lt.s32.totalorder %v662_v37, %v663_v38 }
 0x309   :  { %v665_v39 = vsel %vm664_vm3, %v662_v37, %v663_v38 }
 0x30a   :  { %v666_v40 = vrot.slane %v665_v39, 2 }
 0x30c   :  { %vm667_vm4 = vcmp.lt.s32.totalorder %v665_v39, %v666_v40 }
 0x30d   :  { %v668_v41 = vsel %vm667_vm4, %v665_v39, %v666_v40 }
 0x30e   :  { %v669_v43 = vrot.slane %v668_v41, 1 }
 0x310   :  { %vm670_vm5 = vcmp.lt.s32.totalorder %v668_v41, %v669_v43 }
 0x311   :  { %v671_v44 = vsel %vm670_vm5, %v668_v41, %v669_v43 }
 0x312   :  { %1259 = vst [vmem:[%s2419_s13] sm:$0x1] %v671_v44  ;;  %vm672_vm6 = vcmp.eq.s32.totalorder %v625_v7, %v671_v44  ;;  %vm673_vm7 = vcmp.eq.s32.totalorder %v626_v13, %v671_v44  ;;  %vm674_vm8 = vcmp.eq.s32.totalorder %v627_v14, %v671_v44  ;;  %vm675_vm9 = vcmp.eq.s32.totalorder %v628_v16, %v671_v44 }
 0x313   :  { %v1496_v47 = vsel %vm672_vm6, 1.0, %v1866_v46  ;;  %v1497_v48 = vsel %vm673_vm7, 1.0, %v1866_v46  ;;  %v1498_v49 = vsel %vm674_vm8, 1.0, %v1866_v46  ;;  %v1499_v50 = vsel %vm675_vm9, 1.0, %v1866_v46 }
 0x314   :  { %696 = vxpose.xlu0.b32.start [1/8] (short) %v1496_v47, 128  ;;  %vm676_vm10 = vcmp.eq.s32.totalorder %v629_v19, %v671_v44  ;;  %vm677_vm11 = vcmp.eq.s32.totalorder %v630_v17, %v671_v44  ;;  %vm678_vm12 = vcmp.eq.s32.totalorder %v2141_v20, %v671_v44  ;;  %vm679_vm13 = vcmp.eq.s32.totalorder %v2143_v21, %v671_v44  ;;  %v1813_v20 = vld [vmem:[%s2414_s8] sm:$0xff]   ;;  %v1814_v21 = vld [vmem:[%s2414_s8 + $0x8] sm:$0xff]  }
 0x315   :  { %v1500_v51 = vsel %vm676_vm10, 1.0, %v1866_v46  ;;  %v1501_v54 = vsel %vm677_vm11, 1.0, %v1866_v46  ;;  %v1502_v55 = vsel %vm678_vm12, 1.0, %v1866_v46  ;;  %v1503_v56 = vsel %vm679_vm13, 1.0, %v1866_v46  ;;  %1725 = vmatprep.subr.bf16.mxu0 %v1813_v20 }
 0x318   :  { %697 = vxpose.xlu0.b32.cont [2/8] (short) %v1497_v48, 128 }
 0x31c   :  { %698 = vxpose.xlu0.b32.cont [3/8] (short) %v1498_v49, 128 }
 0x320   :  { %699 = vxpose.xlu0.b32.cont [4/8] (short) %v1499_v50, 128 }
 0x324   :  { %700 = vxpose.xlu0.b32.cont [5/8] (short) %v1500_v51, 128 }
 0x328   :  { %701 = vxpose.xlu0.b32.cont [6/8] (short) %v1501_v54, 128 }
 0x32c   :  { %702 = vxpose.xlu0.b32.cont [7/8] (short) %v1502_v55, 128 }
 0x330   :  { %703 = vxpose.xlu0.b32.end [8/8] (short) %v1503_v56, 128 }
 0x394   :  { %v712_v57 = vpop.trf.xlu0 }
 0x395   :  { %1701 = vmatprep.mubr.msk.f32.mxu0 %vm728_vm14, %v712_v57 }
 0x398   :  { %v713_v60 = vpop.trf.xlu0 }
 0x399   :  { %1702 = vmatmul.mubr.msk.f32.vlgmr.msra.gmra.mrb[16].mxu0 %vm728_vm14, %v713_v60 }
 0x39a   :  { %1726 = vmatpush3.bf16.msra.mxu0 %v1813_v20 }
 0x39b   :  { %1727 = vmatprep.subr.bf16.mxu0 %v1814_v21 }
 0x39c   :  { %v714_v61 = vpop.trf.xlu0 }
 0x39d   :  { %1704 = vmatprep.mubr.msk.f32.mxu0 %vm728_vm14, %v714_v61 }
 0x39e   :  { %1728 = vmatpush3.bf16.msra.mxu0 %v1814_v21 }
 0x3a0   :  { %v715_v62 = vpop.trf.xlu0 }
 0x3a1   :  { %1705 = vmatmul.mubr.msk.f32.gmra.mrb[18].mxu0 %vm728_vm14, %v715_v62 }
 0x3a4   :  { %v716_v63 = vpop.trf.xlu0 }
 0x3a5   :  { %1707 = vmatprep.mubr.msk.f32.mxu0 %vm728_vm14, %v716_v63 }
 0x3a8   :  { %v717_v2 = vpop.trf.xlu0 }
 0x3a9   :  { %1708 = vmatmul.mubr.msk.f32.gmra.mrb[20].mxu0 %vm728_vm14, %v717_v2 }
 0x3ac   :  { %v718_v3 = vpop.trf.xlu0 }
 0x3ad   :  { %1710 = vmatprep.mubr.msk.f32.mxu0 %vm728_vm14, %v718_v3 }
 0x3b0   :  { %v719_v6 = vpop.trf.xlu0 }
 0x3b1   :  { %1711 = vmatmul.mubr.msk.f32.gmra.mrb[22].mxu0 %vm728_vm14, %v719_v6 }
 0x3b4   :  { %v720_v7 = vpop.trf.xlu0 }
 0x3b5   :  { %1713 = vmatprep.mubr.msk.f32.mxu0 %vm728_vm14, %v720_v7 }
 0x3b8   :  { %v721_v10 = vpop.trf.xlu0 }
 0x3b9   :  { %1714 = vmatmul.mubr.msk.f32.gmra.mrb[24].mxu0 %vm728_vm14, %v721_v10 }
 0x3bc   :  { %v722_v11 = vpop.trf.xlu0 }
 0x3bd   :  { %1716 = vmatprep.mubr.msk.f32.mxu0 %vm728_vm14, %v722_v11 }
 0x3c0   :  { %v723_v13 = vpop.trf.xlu0 }
 0x3c1   :  { %1717 = vmatmul.mubr.msk.f32.gmra.mrb[26].mxu0 %vm728_vm14, %v723_v13 }
 0x3c4   :  { %v724_v14 = vpop.trf.xlu0 }
 0x3c5   :  { %1719 = vmatprep.mubr.msk.f32.mxu0 %vm728_vm14, %v724_v14 }
 0x3c8   :  { %v725_v16 = vpop.trf.xlu0 }
 0x3c9   :  { %1720 = vmatmul.mubr.msk.f32.gmra.mrb[28].mxu0 %vm728_vm14, %v725_v16 }
 0x3cc   :  { %v726_v19 = vpop.trf.xlu0 }
 0x3cd   :  { %1722 = vmatprep.mubr.msk.f32.mxu0 %vm728_vm14, %v726_v19 }
 0x3d0   :  { %v727_v17 = vpop.trf.xlu0 }
 0x3d1   :  { %1723 = vmatmul.mubr.msk.f32.gmra.mrb[30].mxu0 %vm728_vm14, %v727_v17 }
 0x46c   :  { %v1703_v22 = vpop.f32.mrb[16].mxu0 }
 0x46d   :  { %v1261_v23 = vsub.f32 %v2075_v35, %v1703_v22  ;;  %v843_v24 = vpop.f32.mrb[17].mxu0 }
 0x46e   :  { %v922_v25 = vpack.c.bf16 %v1703_v22, %v843_v24  ;;  %v1260_v26 = vsub.f32 %v2071_v33, %v843_v24 }
 0x46f   :  { %v1309_v27 = vmul.f32 %v1261_v23, %v1261_v23 }
 0x470   :  { %v1308_v28 = vmul.f32 %v1260_v26, %v1260_v26  ;;  %1729 = vmatprep.mubr.msk.bf16.mxu0 %vm304_vm2, %v922_v25 }
 0x471   :  { %v1325_v12 = vsel %vm304_vm2, %v1309_v27, 0.0 }
 0x472   :  { %v1324_v29 = vsel %vm304_vm2, %v1308_v28, 0.0 }
 0x473   :  { %v1326_v30 = vadd.f32 %v1325_v12, %v1324_v29 }
 0x474   :  { %v1706_v15 = vpop.f32.mrb[18].mxu0 }
 0x475   :  { %v1263_v31 = vsub.f32 %v2073_v34, %v1706_v15  ;;  %v853_v32 = vpop.f32.mrb[19].mxu0 }
 0x476   :  { %v923_v18 = vpack.c.bf16 %v1706_v15, %v853_v32  ;;  %v1262_v35 = vsub.f32 %v2077_v36, %v853_v32 }
 0x477   :  { %v1311_v37 = vmul.f32 %v1263_v31, %v1263_v31 }
 0x478   :  { %v1310_v38 = vmul.f32 %v1262_v35, %v1262_v35  ;;  %1730 = vmatmul.mubr.msk.bf16.vlgmr.msra.gmra.mrb[32].mxu0 %vm304_vm2, %v923_v18 }
 0x479   :  { %v1329_v40 = vsel %vm304_vm2, %v1311_v37, 0.0 }
 0x47a   :  { %v1327_v33 = vsel %vm304_vm2, %v1310_v38, 0.0 }
 0x47b   :  { %v1328_v39 = vadd.f32 %v1327_v33, %v1326_v30 }
 0x47c   :  { %v1709_v41 = vpop.f32.mrb[20].mxu0 }
 0x47d   :  { %v1265_v43 = vsub.f32 %v2088_v45, %v1709_v41  ;;  %v863_v44 = vpop.f32.mrb[21].mxu0  ;;  %v1330_v46 = vadd.f32 %v1329_v40, %v1328_v39 }
 0x47e   :  { %v924_v47 = vpack.c.bf16 %v1709_v41, %v863_v44  ;;  %v1264_v34 = vsub.f32 %v2085_v42, %v863_v44 }
 0x47f   :  { %v1313_v48 = vmul.f32 %v1265_v43, %v1265_v43 }
 0x480   :  { %v1312_v49 = vmul.f32 %v1264_v34, %v1264_v34  ;;  %1733 = vmatprep.mubr.msk.bf16.mxu0 %vm304_vm2, %v924_v47 }
 0x481   :  { %v1333_v51 = vsel %vm304_vm2, %v1313_v48, 0.0 }
 0x482   :  { %v1331_v36 = vsel %vm304_vm2, %v1312_v49, 0.0 }
 0x483   :  { %v1332_v50 = vadd.f32 %v1331_v36, %v1330_v46 }
 0x484   :  { %v1712_v54 = vpop.f32.mrb[22].mxu0 }
 0x485   :  { %v1267_v55 = vsub.f32 %v2096_v53, %v1712_v54  ;;  %v873_v56 = vpop.f32.mrb[23].mxu0  ;;  %v1334_v57 = vadd.f32 %v1333_v51, %v1332_v50 }
 0x486   :  { %v925_v45 = vpack.c.bf16 %v1712_v54, %v873_v56  ;;  %v1266_v60 = vsub.f32 %v2094_v52, %v873_v56 }
 0x487   :  { %v1315_v61 = vmul.f32 %v1267_v55, %v1267_v55  ;;  %v1520_v55 = vld [vmem:[%s2415_s9] ss:$0 sm:$0xff] }
 0x488   :  { %v1314_v62 = vmul.f32 %v1266_v60, %v1266_v60  ;;  %1734 = vmatmul.mubr.msk.bf16.gmra.mrb[36].mxu0 %vm304_vm2, %v925_v45 }
 0x489   :  { %v1337_v2 = vsel %vm304_vm2, %v1315_v61, 0.0 }
 0x48a   :  { %v1335_v42 = vsel %vm304_vm2, %v1314_v62, 0.0 }
 0x48b   :  { %v1336_v63 = vadd.f32 %v1335_v42, %v1334_v57 }
 0x48c   :  { %v1715_v3 = vpop.f32.mrb[24].mxu0 }
 0x48d   :  { %v1269_v6 = vsub.f32 %v2104_v59, %v1715_v3  ;;  %v883_v7 = vpop.f32.mrb[25].mxu0  ;;  %v1338_v10 = vadd.f32 %v1337_v2, %v1336_v63 }
 0x48e   :  { %v926_v53 = vpack.c.bf16 %v1715_v3, %v883_v7  ;;  %v1268_v11 = vsub.f32 %v2101_v58, %v883_v7 }
 0x48f   :  { %v1317_v13 = vmul.f32 %v1269_v6, %v1269_v6 }
 0x490   :  { %v1316_v14 = vmul.f32 %v1268_v11, %v1268_v11  ;;  %1737 = vmatprep.mubr.msk.bf16.mxu0 %vm304_vm2, %v926_v53 }
 0x491   :  { %v1341_v19 = vsel %vm304_vm2, %v1317_v13, 0.0 }
 0x492   :  { %v1339_v52 = vsel %vm304_vm2, %v1316_v14, 0.0 }
 0x493   :  { %v1340_v16 = vadd.f32 %v1339_v52, %v1338_v10 }
 0x494   :  { %v1718_v17 = vpop.f32.mrb[26].mxu0 }
 0x495   :  { %v1271_v20 = vsub.f32 %v2112_v1, %v1718_v17  ;;  %v893_v21 = vpop.f32.mrb[27].mxu0  ;;  %v1342_v22 = vadd.f32 %v1341_v19, %v1340_v16 }
 0x496   :  { %v927_v59 = vpack.c.bf16 %v1718_v17, %v893_v21  ;;  %v1270_v23 = vsub.f32 %v2110_v0, %v893_v21 }
 0x497   :  { %v1319_v24 = vmul.f32 %v1271_v20, %v1271_v20 }
 0x498   :  { %v1318_v25 = vmul.f32 %v1270_v23, %v1270_v23  ;;  %1738 = vmatmul.mubr.msk.bf16.gmra.mrb[40].mxu0 %vm304_vm2, %v927_v59 }
 0x499   :  { %v1345_v27 = vsel %vm304_vm2, %v1319_v24, 0.0 }
 0x49a   :  { %v1343_v58 = vsel %vm304_vm2, %v1318_v25, 0.0 }
 0x49b   :  { %v1344_v26 = vadd.f32 %v1343_v58, %v1342_v22 }
 0x49c   :  { %v1721_v28 = vpop.f32.mrb[28].mxu0 }
 0x49d   :  { %v1273_v12 = vsub.f32 %v2120_v5, %v1721_v28  ;;  %v903_v29 = vpop.f32.mrb[29].mxu0  ;;  %v1346_v30 = vadd.f32 %v1345_v27, %v1344_v26 }
 0x49e   :  { %v928_v1 = vpack.c.bf16 %v1721_v28, %v903_v29  ;;  %v1272_v15 = vsub.f32 %v2117_v4, %v903_v29 }
 0x49f   :  { %v1321_v31 = vmul.f32 %v1273_v12, %v1273_v12 }
 0x4a0   :  { %v1320_v32 = vmul.f32 %v1272_v15, %v1272_v15  ;;  %1741 = vmatprep.mubr.msk.bf16.mxu0 %vm304_vm2, %v928_v1 }
 0x4a1   :  { %v1349_v35 = vsel %vm304_vm2, %v1321_v31, 0.0 }
 0x4a2   :  { %v1347_v0 = vsel %vm304_vm2, %v1320_v32, 0.0 }
 0x4a3   :  { %v1348_v18 = vadd.f32 %v1347_v0, %v1346_v30 }
 0x4a4   :  { %v1724_v37 = vpop.f32.mrb[30].mxu0 }
 0x4a5   :  { %v1275_v38 = vsub.f32 %v2128_v9, %v1724_v37  ;;  %v913_v33 = vpop.f32.mrb[31].mxu0  ;;  %v1350_v39 = vadd.f32 %v1349_v35, %v1348_v18  ;;  %v1815_v9 = vld [vmem:[%s2416_s10] sm:$0xff]  }
 0x4a6   :  { %v929_v5 = vpack.c.bf16 %v1724_v37, %v913_v33  ;;  %v1274_v40 = vsub.f32 %v2126_v8, %v913_v33  ;;  %1745 = vmatprep.subr.bf16.mxu1 %v1815_v9  ;;  %v1816_v8 = vld [vmem:[%s2416_s10 + $0x8] sm:$0xff]  }
 0x4a7   :  { %v1323_v41 = vmul.f32 %v1275_v38, %v1275_v38  ;;  %1746 = vmatpush3.bf16.msra.mxu1 %v1815_v9 }
 0x4a8   :  { %v1322_v43 = vmul.f32 %v1274_v40, %v1274_v40  ;;  %1742 = vmatmul.mubr.msk.bf16.gmra.mrb[44].mxu0 %vm304_vm2, %v929_v5  ;;  %1747 = vmatprep.subr.bf16.mxu1 %v1816_v8 }
 0x4a9   :  { %v1353_v46 = vsel %vm304_vm2, %v1323_v41, 0.0 }
 0x4aa   :  { %v1351_v4 = vsel %vm304_vm2, %v1322_v43, 0.0 }
 0x4ab   :  { %v1352_v44 = vadd.f32 %v1351_v4, %v1350_v39  ;;  %1748 = vmatpush3.bf16.msra.mxu1 %v1816_v8 }
 0x4ad   :  { %v1354_v47 = vadd.f32 %v1353_v46, %v1352_v44 }
 0x4af   :  { %1355 = vadd.xlane.f32.xlu1 %v1354_v47 }
 0x53c   :  { %v1356_v34 = vpop.xlane.xlu1 %1355 }
 0x53d   :  { %v1357_v48 = vrot.slane %v1356_v34, 4 }
 0x53f   :  { %v1358_v49 = vadd.f32 %v1357_v48, %v1356_v34  ;;  %v2235_v48 = vld [vmem:[%s2417_s11] ss:$0 sm:$0xff] }
 0x541   :  { %v1359_v36 = vrot.slane %v1358_v49, 2 }
 0x543   :  { %v1360_v50 = vadd.f32 %v1359_v36, %v1358_v49 }
 0x545   :  { %v1361_v51 = vrot.slane %v1360_v50, 1 }
 0x547   :  { %v1362_v54 = vadd.f32 %v1361_v51, %v1360_v50  ;;  %v1278_v50 = vld [vmem:[%s2407_s1 + $0x10] sm:$0xff] }
 0x549   :  { %1790 = vpush %v1362_v54  ;;  %v1276_v54 = vld [vmem:[%s2407_s1] sm:$0xff] }
 0x54b   :  { %v1731_v56 = vpop.f32.mrb[32].mxu0 }
 0x54c   :  { %v1020_v57 = vadd.f32 %v1731_v56, %v1520_v55  ;;  %v1011_v45 = vpop.f32.mrb[33].mxu0 }
 0x54d   :  { %v1012_v60 = vadd.f32 %v1520_v55, %v1011_v45  ;;  %v1732_v61 = vpop.f32.mrb[34].mxu0  ;;  %v1279_v45 = vld [vmem:[%s2407_s1 + $0x18] sm:$0xff] }
 0x54e   :  { %v1023_v62 = vadd.f32 %v1732_v61, %v1520_v55  ;;  %v1014_v42 = vpop.f32.mrb[35].mxu0  ;;  %v1076_v2 = vmax.f32 %v1020_v57, 0.0  ;;  %v1277_v61 = vld [vmem:[%s2407_s1 + $0x8] sm:$0xff] }
 0x54f   :  { %v1015_v63 = vadd.f32 %v1520_v55, %v1014_v42  ;;  %v1074_v6 = vmax.f32 %v1012_v60, 0.0 }
 0x550   :  { %v1077_v3 = vmax.f32 %v1023_v62, 0.0 }
 0x551   :  { %v1075_v7 = vmax.f32 %v1015_v63, 0.0 }
 0x552   :  { %v1091_v10 = vpack.c.bf16 %v1077_v3, %v1076_v2 }
 0x553   :  { %v1090_v53 = vpack.c.bf16 %v1075_v7, %v1074_v6 }
 0x555   :  { %1749 = vmatprep.mubr.msk.bf16.mxu1 %vm304_vm2, %v1090_v53 }
 0x556   :  { %1750 = vmatmul.mubr.msk.bf16.vlgmr.msra.gmra.mrb[24].mxu1 %vm304_vm2, %v1091_v10 }
 0x55b   :  { %v1735_v11 = vpop.f32.mrb[36].mxu0 }
 0x55c   :  { %v1036_v13 = vadd.f32 %v1735_v11, %v1520_v55  ;;  %v1027_v14 = vpop.f32.mrb[37].mxu0 }
 0x55d   :  { %v1028_v52 = vadd.f32 %v1520_v55, %v1027_v14  ;;  %v1736_v16 = vpop.f32.mrb[38].mxu0 }
 0x55e   :  { %v1039_v19 = vadd.f32 %v1736_v16, %v1520_v55  ;;  %v1030_v17 = vpop.f32.mrb[39].mxu0  ;;  %v1080_v21 = vmax.f32 %v1036_v13, 0.0 }
 0x55f   :  { %v1031_v20 = vadd.f32 %v1520_v55, %v1030_v17  ;;  %v1078_v59 = vmax.f32 %v1028_v52, 0.0 }
 0x560   :  { %v1081_v22 = vmax.f32 %v1039_v19, 0.0 }
 0x561   :  { %v1079_v23 = vmax.f32 %v1031_v20, 0.0 }
 0x562   :  { %v1093_v24 = vpack.c.bf16 %v1081_v22, %v1080_v21  ;;  %v1282_v22 = vld [vmem:[%s2407_s1 + $0x30] sm:$0xff] }
 0x563   :  { %v1092_v25 = vpack.c.bf16 %v1079_v23, %v1078_v59  ;;  %v1280_v23 = vld [vmem:[%s2407_s1 + $0x20] sm:$0xff] }
 0x565   :  { %1753 = vmatprep.mubr.msk.bf16.mxu1 %vm304_vm2, %v1092_v25 }
 0x566   :  { %1754 = vmatmul.mubr.msk.bf16.gmra.mrb[28].mxu1 %vm304_vm2, %v1093_v24 }
 0x56b   :  { %v1739_v58 = vpop.f32.mrb[40].mxu0 }
 0x56c   :  { %v1052_v26 = vadd.f32 %v1739_v58, %v1520_v55  ;;  %v1043_v27 = vpop.f32.mrb[41].mxu0 }
 0x56d   :  { %v1044_v28 = vadd.f32 %v1520_v55, %v1043_v27  ;;  %v1740_v12 = vpop.f32.mrb[42].mxu0 }
 0x56e   :  { %v1055_v29 = vadd.f32 %v1740_v12, %v1520_v55  ;;  %v1046_v30 = vpop.f32.mrb[43].mxu0  ;;  %v1084_v15 = vmax.f32 %v1052_v26, 0.0  ;;  %v1283_v26 = vld [vmem:[%s2407_s1 + $0x38] sm:$0xff] }
 0x56f   :  { %v1047_v1 = vadd.f32 %v1520_v55, %v1046_v30  ;;  %v1082_v32 = vmax.f32 %v1044_v28, 0.0  ;;  %v1281_v28 = vld [vmem:[%s2407_s1 + $0x28] sm:$0xff] }
 0x570   :  { %v1085_v31 = vmax.f32 %v1055_v29, 0.0 }
 0x571   :  { %v1083_v0 = vmax.f32 %v1047_v1, 0.0 }
 0x572   :  { %v1095_v18 = vpack.c.bf16 %v1085_v31, %v1084_v15 }
 0x573   :  { %v1094_v35 = vpack.c.bf16 %v1083_v0, %v1082_v32 }
 0x575   :  { %1757 = vmatprep.mubr.msk.bf16.mxu1 %vm304_vm2, %v1094_v35 }
 0x576   :  { %1758 = vmatmul.mubr.msk.bf16.gmra.mrb[32].mxu1 %vm304_vm2, %v1095_v18 }
 0x57a   :  { %s1791_s9 = spop %1790 }
 0x57b   :  { %v1364_v37 = vstv %s1791_s9  ;;  %v1743_v38 = vpop.f32.mrb[44].mxu0 }
 0x57c   :  { %v1068_v33 = vadd.f32 %v1743_v38, %v1520_v55  ;;  %v1059_v39 = vpop.f32.mrb[45].mxu0  ;;  %1366 = vst.msk [vmem:[#allocation2] sm:$0x1] %vm1365_vm15, %v1364_v37 }
 0x57d   :  { %v1060_v5 = vadd.f32 %v1520_v55, %v1059_v39  ;;  %v1744_v40 = vpop.f32.mrb[46].mxu0 }
 0x57e   :  { %v1071_v41 = vadd.f32 %v1744_v40, %v1520_v55  ;;  %v1062_v43 = vpop.f32.mrb[47].mxu0  ;;  %v1088_v44 = vmax.f32 %v1068_v33, 0.0 }
 0x57f   :  { %v1063_v4 = vadd.f32 %v1520_v55, %v1062_v43  ;;  %v1086_v47 = vmax.f32 %v1060_v5, 0.0 }
 0x580   :  { %v1089_v46 = vmax.f32 %v1071_v41, 0.0 }
 0x581   :  { %v1087_v9 = vmax.f32 %v1063_v4, 0.0 }
 0x582   :  { %v1097_v8 = vpack.c.bf16 %v1089_v46, %v1088_v44  ;;  %v1286_v44 = vld [vmem:[%s2407_s1 + $0x50] sm:$0xff] }
 0x583   :  { %v1096_v34 = vpack.c.bf16 %v1087_v9, %v1086_v47  ;;  %v1284_v47 = vld [vmem:[%s2407_s1 + $0x40] sm:$0xff] }
 0x585   :  { %1761 = vmatprep.mubr.msk.bf16.mxu1 %vm304_vm2, %v1096_v34 }
 0x586   :  { %1762 = vmatmul.mubr.msk.bf16.gmra.mrb[36].mxu1 %vm304_vm2, %v1097_v8 }
 0x629   :  { %v1751_v49 = vpop.f32.mrb[24].mxu1 }
 0x62a   :  { %v1188_v36 = vadd.f32 %v1751_v49, %v2235_v48  ;;  %v1179_v51 = vpop.f32.mrb[25].mxu1  ;;  %v1287_v49 = vld [vmem:[%s2407_s1 + $0x58] sm:$0xff] }
 0x62b   :  { %v1180_v55 = vadd.f32 %v2235_v48, %v1179_v51  ;;  %v1752_v56 = vpop.f32.mrb[26].mxu1 }
 0x62c   :  { %1245 = vst.msk [vmem:[%s2418_s12 + $0x10] sm:$0xff] %vm1242_vm0, %v1188_v36  ;;  %v1191_v57 = vadd.f32 %v1752_v56, %v2235_v48  ;;  %v1182_v60 = vpop.f32.mrb[27].mxu1  ;;  %v1294_v62 = vsub.f32 %v1188_v36, %v1278_v50  ;;  %v1285_v50 = vld [vmem:[%s2407_s1 + $0x48] sm:$0xff] }
 0x62d   :  { %1243 = vst.msk [vmem:[%s2418_s12] sm:$0xff] %vm1242_vm0, %v1180_v55  ;;  %v1292_v42 = vsub.f32 %v1180_v55, %v1276_v54  ;;  %v1183_v63 = vadd.f32 %v2235_v48, %v1182_v60 }
 0x62e   :  { %1246 = vst.msk [vmem:[%s2418_s12 + $0x18] sm:$0xff] %vm1242_vm0, %v1191_v57  ;;  %v1295_v3 = vsub.f32 %v1191_v57, %v1279_v45  ;;  %v1369_v7 = vmul.f32 %v1294_v62, %v1294_v62 }
 0x62f   :  { %v1367_v2 = vmul.f32 %v1292_v42, %v1292_v42  ;;  %1244 = vst.msk [vmem:[%s2418_s12 + $0x8] sm:$0xff] %vm1242_vm0, %v1183_v63  ;;  %v1293_v6 = vsub.f32 %v1183_v63, %v1277_v61 }
 0x630   :  { %v1370_v11 = vmul.f32 %v1295_v3, %v1295_v3  ;;  %v1386_v52 = vsel %vm1242_vm0, %v1369_v7, 0.0 }
 0x631   :  { %v1368_v10 = vmul.f32 %v1293_v6, %v1293_v6  ;;  %v1383_v53 = vsel %vm1242_vm0, %v1367_v2, 0.0 }
 0x632   :  { %v1388_v19 = vsel %vm1242_vm0, %v1370_v11, 0.0 }
 0x633   :  { %v1384_v13 = vsel %vm1242_vm0, %v1368_v10, 0.0 }
 0x634   :  { %v1385_v14 = vadd.f32 %v1384_v13, %v1383_v53 }
 0x636   :  { %v1387_v16 = vadd.f32 %v1386_v52, %v1385_v14  ;;  %v1290_v14 = vld [vmem:[%s2407_s1 + $0x70] sm:$0xff] }
 0x638   :  { %v1389_v17 = vadd.f32 %v1388_v19, %v1387_v16  ;;  %v1288_v16 = vld [vmem:[%s2407_s1 + $0x60] sm:$0xff] }
 0x639   :  { %v1755_v20 = vpop.f32.mrb[28].mxu1 }
 0x63a   :  { %v1204_v21 = vadd.f32 %v1755_v20, %v2235_v48  ;;  %v1195_v59 = vpop.f32.mrb[29].mxu1 }
 0x63b   :  { %v1196_v24 = vadd.f32 %v2235_v48, %v1195_v59  ;;  %v1756_v25 = vpop.f32.mrb[30].mxu1  ;;  %v1289_v59 = vld [vmem:[%s2407_s1 + $0x68] sm:$0xff] }
 0x63c   :  { %1249 = vst.msk [vmem:[%s2418_s12 + $0x30] sm:$0xff] %vm1242_vm0, %v1204_v21  ;;  %v1207_v58 = vadd.f32 %v1756_v25, %v2235_v48  ;;  %v1198_v27 = vpop.f32.mrb[31].mxu1  ;;  %v1298_v12 = vsub.f32 %v1204_v21, %v1282_v22  ;;  %v1291_v21 = vld [vmem:[%s2407_s1 + $0x78] sm:$0xff]  ;;  %s1867_s1 = smov [#allocation2]  }
 0x63d   :  { %1247 = vst.msk [vmem:[%s2418_s12 + $0x20] sm:$0xff] %vm1242_vm0, %v1196_v24  ;;  %v1296_v29 = vsub.f32 %v1196_v24, %v1280_v23  ;;  %v1199_v30 = vadd.f32 %v2235_v48, %v1198_v27  ;;  %s1435_s23 = sshll.u32 %s1867_s1, 4  ;;  %s1436_s23 = int_to_ptr.vmem [resolvable:$true] %s1435_s23 }
 0x63e   :  { %1250 = vst.msk [vmem:[%s2418_s12 + $0x38] sm:$0xff] %vm1242_vm0, %v1207_v58  ;;  %v1299_v15 = vsub.f32 %v1207_v58, %v1283_v26  ;;  %v1373_v32 = vmul.f32 %v1298_v12, %v1298_v12  ;;  %s1821_s24 = scalar_lea.vmem %s1436_s23, 32  ;;  %p1822_p1 = scmp.lt.s32.totalorder %s1436_s23, %s1436_s23 }
 0x63f   :  { %v1371_v1 = vmul.f32 %v1296_v29, %v1296_v29  ;;  %1248 = vst.msk [vmem:[%s2418_s12 + $0x28] sm:$0xff] %vm1242_vm0, %v1199_v30  ;;  %v1297_v31 = vsub.f32 %v1199_v30, %v1281_v28 }
 0x640   :  { %v1374_v37 = vmul.f32 %v1299_v15, %v1299_v15  ;;  %v1394_v39 = vsel %vm1242_vm0, %v1373_v32, 0.0 }
 0x641   :  { %v1390_v0 = vsel %vm1242_vm0, %v1371_v1, 0.0  ;;  %v1372_v18 = vmul.f32 %v1297_v31, %v1297_v31 }
 0x642   :  { %v1391_v35 = vadd.f32 %v1390_v0, %v1389_v17  ;;  %v1396_v40 = vsel %vm1242_vm0, %v1374_v37, 0.0 }
 0x643   :  { %v1392_v38 = vsel %vm1242_vm0, %v1372_v18, 0.0 }
 0x644   :  { %v1393_v33 = vadd.f32 %v1392_v38, %v1391_v35 }
 0x646   :  { %v1395_v5 = vadd.f32 %v1394_v39, %v1393_v33 }
 0x648   :  { %v1397_v41 = vadd.f32 %v1396_v40, %v1395_v5 }
 0x649   :  { %v1759_v43 = vpop.f32.mrb[32].mxu1 }
 0x64a   :  { %v1220_v4 = vadd.f32 %v1759_v43, %v2235_v48  ;;  %v1211_v46 = vpop.f32.mrb[33].mxu1 }
 0x64b   :  { %v1212_v9 = vadd.f32 %v2235_v48, %v1211_v46  ;;  %v1760_v8 = vpop.f32.mrb[34].mxu1 }
 0x64c   :  { %1253 = vst.msk [vmem:[%s2418_s12 + $0x50] sm:$0xff] %vm1242_vm0, %v1220_v4  ;;  %v1223_v34 = vadd.f32 %v1760_v8, %v2235_v48  ;;  %v1214_v36 = vpop.f32.mrb[35].mxu1  ;;  %v1302_v51 = vsub.f32 %v1220_v4, %v1286_v44 }
 0x64d   :  { %1251 = vst.msk [vmem:[%s2418_s12 + $0x40] sm:$0xff] %vm1242_vm0, %v1212_v9  ;;  %v1300_v54 = vsub.f32 %v1212_v9, %v1284_v47  ;;  %v1215_v55 = vadd.f32 %v2235_v48, %v1214_v36 }
 0x64e   :  { %1254 = vst.msk [vmem:[%s2418_s12 + $0x58] sm:$0xff] %vm1242_vm0, %v1223_v34  ;;  %v1303_v57 = vsub.f32 %v1223_v34, %v1287_v49  ;;  %v1377_v60 = vmul.f32 %v1302_v51, %v1302_v51 }
 0x64f   :  { %v1375_v56 = vmul.f32 %v1300_v54, %v1300_v54  ;;  %1252 = vst.msk [vmem:[%s2418_s12 + $0x48] sm:$0xff] %vm1242_vm0, %v1215_v55  ;;  %v1301_v45 = vsub.f32 %v1215_v55, %v1285_v50 }
 0x650   :  { %v1378_v63 = vmul.f32 %v1303_v57, %v1303_v57  ;;  %v1402_v6 = vsel %vm1242_vm0, %v1377_v60, 0.0 }
 0x651   :  { %v1398_v61 = vsel %vm1242_vm0, %v1375_v56, 0.0  ;;  %v1376_v62 = vmul.f32 %v1301_v45, %v1301_v45 }
 0x652   :  { %v1399_v42 = vadd.f32 %v1398_v61, %v1397_v41  ;;  %v1404_v10 = vsel %vm1242_vm0, %v1378_v63, 0.0 }
 0x653   :  { %v1400_v2 = vsel %vm1242_vm0, %v1376_v62, 0.0 }
 0x654   :  { %v1401_v3 = vadd.f32 %v1400_v2, %v1399_v42 }
 0x656   :  { %v1403_v7 = vadd.f32 %v1402_v6, %v1401_v3 }
 0x658   :  { %v1405_v53 = vadd.f32 %v1404_v10, %v1403_v7 }
 0x659   :  { %v1763_v11 = vpop.f32.mrb[36].mxu1 }
 0x65a   :  { %v1236_v13 = vadd.f32 %v1763_v11, %v2235_v48  ;;  %v1227_v52 = vpop.f32.mrb[37].mxu1 }
 0x65b   :  { %v1228_v19 = vadd.f32 %v2235_v48, %v1227_v52  ;;  %v1764_v17 = vpop.f32.mrb[38].mxu1 }
 0x65c   :  { %1257 = vst.msk [vmem:[%s2418_s12 + $0x70] sm:$0xff] %vm1242_vm0, %v1236_v13  ;;  %v1239_v20 = vadd.f32 %v1764_v17, %v2235_v48  ;;  %v1230_v22 = vpop.f32.mrb[39].mxu1  ;;  %v1306_v23 = vsub.f32 %v1236_v13, %v1290_v14 }
 0x65d   :  { %1255 = vst.msk [vmem:[%s2418_s12 + $0x60] sm:$0xff] %vm1242_vm0, %v1228_v19  ;;  %v1304_v24 = vsub.f32 %v1228_v19, %v1288_v16  ;;  %v1231_v25 = vadd.f32 %v2235_v48, %v1230_v22 }
 0x65e   :  { %1258 = vst.msk [vmem:[%s2418_s12 + $0x78] sm:$0xff] %vm1242_vm0, %v1239_v20  ;;  %v1307_v26 = vsub.f32 %v1239_v20, %v1291_v21  ;;  %v1381_v28 = vmul.f32 %v1306_v23, %v1306_v23 }
 0x65f   :  { %v1379_v58 = vmul.f32 %v1304_v24, %v1304_v24  ;;  %1256 = vst.msk [vmem:[%s2418_s12 + $0x68] sm:$0xff] %vm1242_vm0, %v1231_v25  ;;  %v1305_v27 = vsub.f32 %v1231_v25, %v1289_v59  ;;  %s1817_s12 = scalar_lea.vmem %s1436_s23, 16 }
 0x660   :  { %v1382_v1 = vmul.f32 %v1307_v26, %v1307_v26  ;;  %v1410_v31 = vsel %vm1242_vm0, %v1381_v28, 0.0  ;;  %p1818_p0 = scmp.ne.s32.totalorder %s1436_s23, %s1817_s12  ;;  %p1823_p2 = scmp.lt.s32.totalorder %s1821_s24, %s1817_s12 }
 0x661   :  { %v1406_v12 = vsel %vm1242_vm0, %v1379_v58, 0.0  ;;  %v1380_v29 = vmul.f32 %v1305_v27, %v1305_v27 }
 0x662   :  { %v1407_v30 = vadd.f32 %v1406_v12, %v1405_v53  ;;  %v1412_v0 = vsel %vm1242_vm0, %v1382_v1, 0.0  ;;  %p1824_p3 = por %p1823_p2, %p1822_p1 }
 0x663   :  { %v1408_v48 = vsel %vm1242_vm0, %v1380_v29, 0.0 }
 0x664   :  { %v1409_v15 = vadd.f32 %v1408_v48, %v1407_v30  ;;  %p1825_p4 = pnand %p1824_p3, %p1818_p0 }
 0x666   :  { %v1411_v32 = vadd.f32 %v1410_v31, %v1409_v15 }
 0x668   :  { %v1413_v18 = vadd.f32 %v1412_v0, %v1411_v32 }
 0x66a   :  { %1414 = vadd.xlane.f32.xlu1 %v1413_v18 }
 0x66b   :  { %1828 = shalt.err (!%p1825_p4)
}
 0x66c   :  { %s1829_s13 = scalar_lea.hbm %s2420_s14, 16 }
 0x66d   :  { %p1830_p5 = scmp.ne.s32.totalorder %s2420_s14, %s1829_s13  ;;  %p1833_p6 = scmp.lt.u32.totalorder %s1829_s13, %s2420_s14 }
 0x66f   :  { %p1835_p7 = pnand %p1833_p6, %p1830_p5 }
 0x671   :  { %1838 = shalt.err (!%p1835_p7)
}
 0x672   :  { %1438 = dma.vmem_to_hbm [thread:$0]  %s1436_s23, 16, %s2420_s14, [#allocation3]  }
 0x673   :  { %s1868_s0 = smov [#allocation4]  }
 0x674   :  { %s1445_s6 = sshll.u32 %s1868_s0, 4  ;;  %s1446_s6 = int_to_ptr.vmem [resolvable:$true] %s1445_s6 }
 0x675   :  { %s1839_s9 = scalar_lea.vmem %s1446_s6, 16  ;;  %s1843_s10 = scalar_lea.vmem %s1446_s6, 32 }
 0x676   :  { %p1840_p8 = scmp.ne.s32.totalorder %s1446_s6, %s1839_s9  ;;  %p1844_p9 = scmp.lt.s32.totalorder %s1446_s6, %s1446_s6 }
 0x677   :  { %p1845_p10 = scmp.lt.s32.totalorder %s1843_s10, %s1839_s9 }
 0x679   :  { %p1846_p11 = por %p1845_p10, %p1844_p9 }
 0x67b   :  { %p1847_p12 = pnand %p1846_p11, %p1840_p8 }
 0x6f7   :  { %v1415_v35 = vpop.xlane.xlu1 %1414 }
 0x6f8   :  { %v1416_v37 = vrot.slane %v1415_v35, 4 }
 0x6fa   :  { %v1417_v38 = vadd.f32 %v1416_v37, %v1415_v35 }
 0x6fc   :  { %v1418_v33 = vrot.slane %v1417_v38, 2 }
 0x6fe   :  { %v1419_v39 = vadd.f32 %v1418_v33, %v1417_v38 }
 0x700   :  { %v1420_v5 = vrot.slane %v1419_v39, 1 }
 0x702   :  { %v1421_v40 = vadd.f32 %v1420_v5, %v1419_v39 }
 0x704   :  { %1792 = vpush %v1421_v40 }
 0x735   :  { %s1793_s3 = spop %1792 }
 0x736   :  { %v1423_v41 = vstv %s1793_s3 }
 0x737   :  { %1424 = vst.msk [vmem:[#allocation4] sm:$0x1] %vm1365_vm15, %v1423_v41 }
 0x738   :  { %1850 = shalt.err (!%p1847_p12)
}
 0x739   :  { %s1851_s2 = scalar_lea.hbm %s2421_s15, 16 }
 0x73a   :  { %p1852_p13 = scmp.ne.s32.totalorder %s2421_s15, %s1851_s2  ;;  %p1855_p0 = scmp.lt.u32.totalorder %s1851_s2, %s2421_s15 }
 0x73c   :  { %p1857_p1 = pnand %p1855_p0, %p1852_p13 }
 0x73e   :  { %1860 = shalt.err (!%p1857_p1)
}
 0x73f   :  { %1448 = dma.vmem_to_hbm [thread:$0]  %s1446_s6, 16, %s2421_s15, [#allocation5]  }
 0x740   :  { %1861 = dma.done.wait [#allocation3], 16  }
 0x741   :  { %1862 = vsyncadd [#allocation3], 4294967280 }
 0x742   :  { %1863 = dma.done.wait [#allocation5], 16  }
 0x743   :  { %1864 = vsyncadd [#allocation5], 4294967280 }
 0x744   :  { %1459 = vsyncpa [#allocation3], 1 }
 0x745   :  { %1460 = vsyncpa [#allocation5], 1 }

</bundles_post_ra>
